<compile_context>
chip_gen: v7x
topology: tpu7x:2x2x1
jax: 0.10.0
libtpu: 0.0.40
codegen_flags: <defaults>
</compile_context>

<pallas_src>
import functools

import jax
import jax.numpy as jnp
from jax.experimental import pallas as pl
from jax.experimental.pallas import tpu as pltpu

_LANE = 128                      # lane width / channel-pad granularity
_TM_MAX = 1024                   # max rows per tile
_TK_MAX = 1024                   # max reduction depth per K tile
_TC_CANDS = (512, 256, 128)      # output-channel tile candidates (lane-dense)
_VMEM_LIMIT = 48 * 1024 * 1024   # fits v7x (64 MiB phys); ample on v5e/v6e


# -----------------------------------------------------------------------------
# Small helpers
# -----------------------------------------------------------------------------
def _round_up(x, m):
    return (x + m - 1) // m * m


def _pad_to(a, shape):
    pads = [(0, t - s) for s, t in zip(a.shape, shape)]
    if all(p == (0, 0) for p in pads):
        return a
    return jnp.pad(a, pads)


# -----------------------------------------------------------------------------
# Kernel 1a: single-K-tile fused matmul (no scratch, no init/finalize)
#   out = act( x @ w + bias [+ residual] )
# -----------------------------------------------------------------------------
def _matmul_nk1_kernel(*refs, relu, has_residual):
    if has_residual:
        x_ref, w_ref, b_ref, res_ref, o_ref = refs
    else:
        x_ref, w_ref, b_ref, o_ref = refs
        res_ref = None
    acc = jnp.dot(x_ref[...], w_ref[...], preferred_element_type=jnp.float32)
    acc = acc + b_ref[...]
    if has_residual:
        acc = acc + res_ref[...].astype(jnp.float32)
    if relu:
        acc = jnp.maximum(acc, 0.0)
    o_ref[...] = acc.astype(o_ref.dtype)


# -----------------------------------------------------------------------------
# Kernel 1b: multi-operand / multi-K-tile fused matmul
#   out = act( sum_op sum_k x_op[i,k] @ w_op[k,j] + bias [+ residual] )
#   grid = (M tiles, C tiles, sum of per-operand K tiles); f32 VMEM accumulator.
# -----------------------------------------------------------------------------
def _matmul_multi_kernel(*refs, nks, relu, has_residual):
    n_ops = len(nks)
    xs = refs[0:2 * n_ops:2]
    ws = refs[1:2 * n_ops:2]
    rest = refs[2 * n_ops:]
    if has_residual:
        b_ref, res_ref, o_ref, acc_ref = rest
    else:
        b_ref, o_ref, acc_ref = rest
        res_ref = None

    k = pl.program_id(2)
    nk_total = sum(nks)

    @pl.when(k == 0)
    def _():
        acc_ref[...] = jnp.zeros_like(acc_ref)

    start = 0
    for op, nk in enumerate(nks):
        def _accum(op=op):
            acc_ref[...] += jnp.dot(xs[op][...], ws[op][...],
                                    preferred_element_type=jnp.float32)
        if n_ops == 1:
            _accum()
        else:
            pl.when(jnp.logical_and(k >= start, k < start + nk))(_accum)
        start += nk

    @pl.when(k == nk_total - 1)
    def _():
        acc = acc_ref[...] + b_ref[...]
        if has_residual:
            acc = acc + res_ref[...].astype(jnp.float32)
        if relu:
            acc = jnp.maximum(acc, 0.0)
        o_ref[...] = acc.astype(o_ref.dtype)


def fused_matmul_bias_act(operands, bias, residual=None, relu=True):
    """act(sum_i x_i @ w_i + bias [+ residual]); bf16 operands, f32 accumulate.

    operands: list of (x2d (M, K_i), w (K_i, C)) pairs sharing M and C.
    Returns (M, round_up(C, 128)) bf16 (padded output channels are zero-ish).
    """
    M = operands[0][0].shape[0]
    C_p = _round_up(max(w.shape[1] for _, w in operands), _LANE)
    tc = next(t for t in _TC_CANDS if C_p % t == 0)

    tm = min(_TM_MAX, _round_up(M, 8))
    if C_p // tc < 2:
        # Megacore (v7x): prefer >=2 parallel (M, C) tiles when work allows.
        while tm > 128 and _round_up(M, tm) // tm < 2:
            tm = _round_up(tm // 2, 8)
    M_p = _round_up(M, tm)

    xs_p, ws_p, nks, tks = [], [], [], []
    for x2d, w in operands:
        K = x2d.shape[1]
        K_p = _round_up(K, _LANE)
        nk = -(-K_p // _TK_MAX)
        tk = _round_up(-(-K_p // nk), _LANE)
        K_p = nk * tk
        xs_p.append(_pad_to(x2d, (M_p, K_p)).astype(jnp.bfloat16))
        ws_p.append(_pad_to(w, (K_p, C_p)).astype(jnp.bfloat16))
        nks.append(nk)
        tks.append(tk)

    b_p = _pad_to(bias.reshape(1, -1).astype(jnp.float32), (1, C_p))
    has_res = residual is not None
    nk_total = sum(nks)

    if nk_total == 1:
        # Specialization: single operand, single K tile -> no acc scratch.
        grid = (M_p // tm, C_p // tc)
        in_specs = [pl.BlockSpec((tm, tks[0]), lambda i, j: (i, 0)),
                    pl.BlockSpec((tks[0], tc), lambda i, j: (0, j)),
                    pl.BlockSpec((1, tc), lambda i, j: (0, j))]
        args = [xs_p[0], ws_p[0], b_p]
        if has_res:
            in_specs.append(pl.BlockSpec((tm, tc), lambda i, j: (i, j)))
            args.append(_pad_to(residual, (M_p, C_p)).astype(jnp.bfloat16))
        kernel = functools.partial(_matmul_nk1_kernel, relu=relu,
                                   has_residual=has_res)
        out_spec = pl.BlockSpec((tm, tc), lambda i, j: (i, j))
        scratch = []
        dims = ("parallel", "parallel")
    else:
        grid = (M_p // tm, C_p // tc, nk_total)
        in_specs, args = [], []
        start = 0
        for x_p, w_p, nk, tk in zip(xs_p, ws_p, nks, tks):
            def x_map(i, j, k, s=start, n=nk):
                return (i, jnp.clip(k - s, 0, n - 1))

            def w_map(i, j, k, s=start, n=nk):
                return (jnp.clip(k - s, 0, n - 1), j)

            in_specs += [pl.BlockSpec((tm, tk), x_map),
                         pl.BlockSpec((tk, tc), w_map)]
            args += [x_p, w_p]
            start += nk
        in_specs.append(pl.BlockSpec((1, tc), lambda i, j, k: (0, j)))
        args.append(b_p)
        if has_res:
            in_specs.append(pl.BlockSpec((tm, tc), lambda i, j, k: (i, j)))
            args.append(_pad_to(residual, (M_p, C_p)).astype(jnp.bfloat16))
        kernel = functools.partial(_matmul_multi_kernel, nks=tuple(nks),
                                   relu=relu, has_residual=has_res)
        out_spec = pl.BlockSpec((tm, tc), lambda i, j, k: (i, j))
        scratch = [pltpu.VMEM((tm, tc), jnp.float32)]
        dims = ("parallel", "parallel", "arbitrary")

    out = pl.pallas_call(
        kernel,
        out_shape=jax.ShapeDtypeStruct((M_p, C_p), jnp.bfloat16),
        grid_spec=pltpu.PrefetchScalarGridSpec(
            num_scalar_prefetch=0, grid=grid,
            in_specs=in_specs, out_specs=out_spec,
            scratch_shapes=scratch),
        compiler_params=pltpu.CompilerParams(
            dimension_semantics=dims, vmem_limit_bytes=_VMEM_LIMIT),
    )(*args)
    return out[:M]


# -----------------------------------------------------------------------------
# Kernel 2: 3x3 conv (pad=1, stride s) + folded-BN bias + ReLU
#   In-kernel 9-tap reduction over shifted windows of the padded NHWC input
#   (parity-decomposed planes for stride 2).  No im2col HBM traffic.
# -----------------------------------------------------------------------------
def _conv3x3_kernel(hs_ref, w_ref, b_ref, o_ref, *, stride, Ho, Wo):
    C_in = hs_ref.shape[-1]
    acc = None
    for dy in range(3):
        for dx in range(3):
            plane = (dy % stride) * stride + (dx % stride)
            ih, iw = dy // stride, dx // stride
            tap = hs_ref[plane, ih:ih + Ho, iw:iw + Wo, :]
            part = jnp.dot(tap.reshape(Ho * Wo, C_in), w_ref[dy, dx],
                           preferred_element_type=jnp.float32)
            acc = part if acc is None else acc + part
    acc = acc + b_ref[...]
    o_ref[0] = jnp.maximum(acc, 0.0).astype(o_ref.dtype)


def conv3x3_bn_relu(h_nhwc, w_taps, bias, stride):
    """3x3/pad=1/stride-s conv + folded-BN bias + ReLU.

    h_nhwc: (N, H, W, Cp) bf16 (Cp multiple of 128)
    w_taps: (3, 3, Cp, Co) folded-BN weights; bias: (1, Co) or (Co,) f32
    Returns (N, Ho, Wo, round_up(Co, 128)) bf16.
    """
    N, H, W, Cp = h_nhwc.shape
    Cop = _round_up(w_taps.shape[-1], _LANE)
    Ho = (H + 2 - 3) // stride + 1
    Wo = (W + 2 - 3) // stride + 1
    Hs = Ho + 2 // stride
    Ws = Wo + 2 // stride

    hp = jnp.pad(h_nhwc, ((0, 0), (1, 1), (1, 1), (0, 0)))
    if stride == 1:
        hs = hp                                              # (N, H+2, W+2, Cp)
    else:
        # Parity decomposition: hs[n*s*s + p*s + q, i, j] = hp[n, p+i*s, q+j*s]
        subs = []
        for p in range(stride):
            for q in range(stride):
                sub = hp[:, p::stride, q::stride, :]
                subs.append(_pad_to(sub, (N, Hs, Ws, Cp)))
        hs = jnp.stack(subs, axis=1).reshape(N * stride * stride, Hs, Ws, Cp)

    w_p = _pad_to(w_taps, (3, 3, Cp, Cop)).astype(jnp.bfloat16)
    b_p = _pad_to(bias.reshape(1, -1).astype(jnp.float32), (1, Cop))

    tc = Cop if Cop <= 256 else 256
    out = pl.pallas_call(
        functools.partial(_conv3x3_kernel, stride=stride, Ho=Ho, Wo=Wo),
        out_shape=jax.ShapeDtypeStruct((N, Ho * Wo, Cop), jnp.bfloat16),
        grid_spec=pltpu.PrefetchScalarGridSpec(
            num_scalar_prefetch=0,
            grid=(N, Cop // tc),
            in_specs=[
                pl.BlockSpec((stride * stride, Hs, Ws, Cp),
                             lambda n, j: (n, 0, 0, 0)),
                pl.BlockSpec((3, 3, Cp, tc), lambda n, j: (0, 0, 0, j)),
                pl.BlockSpec((1, tc), lambda n, j: (0, j)),
            ],
            out_specs=pl.BlockSpec((1, Ho * Wo, tc), lambda n, j: (n, 0, j)),
        ),
        compiler_params=pltpu.CompilerParams(
            dimension_semantics=("parallel", "parallel"),
            vmem_limit_bytes=_VMEM_LIMIT),
    )(hs, w_p, b_p)
    return out.reshape(N, Ho, Wo, Cop)


# -----------------------------------------------------------------------------
# Parameter init (deterministic, synthetic) + BN folding + hoisted weight prep
# -----------------------------------------------------------------------------
def _fold_bn(gamma, beta, mean, var, eps=1e-5):
    scale = gamma / jnp.sqrt(var + eps)
    bias = beta - mean * scale
    return scale, bias


def init_params(key, num_in, num_mid, stride):
    num_out = num_mid * 4
    keys = jax.random.split(key, 20)

    def bn_params(k, c):
        kg, kb, km, kv = jax.random.split(k, 4)
        gamma = 1.0 + 0.1 * jax.random.normal(kg, (c,), jnp.float32)
        beta = 0.1 * jax.random.normal(kb, (c,), jnp.float32)
        mean = 0.1 * jax.random.normal(km, (c,), jnp.float32)
        var = jnp.abs(jax.random.normal(kv, (c,), jnp.float32)) + 0.5
        return _fold_bn(gamma, beta, mean, var)

    p = {}
    p['w1'] = 0.1 * jax.random.normal(keys[0], (num_in, num_mid), jnp.float32)
    p['s1'], p['b1'] = bn_params(keys[1], num_mid)
    p['w2'] = 0.1 * jax.random.normal(keys[2], (num_mid, num_mid, 3, 3),
                                      jnp.float32)
    p['s2'], p['b2'] = bn_params(keys[3], num_mid)
    p['w3'] = 0.1 * jax.random.normal(keys[4], (num_mid, num_out), jnp.float32)
    p['s3'], p['b3'] = bn_params(keys[5], num_out)
    if stride != 1 or num_in != num_out:
        p['wd'] = 0.1 * jax.random.normal(keys[6], (num_in, num_out),
                                          jnp.float32)
        p['sd'], p['bd'] = bn_params(keys[7], num_out)
    return p


def prepare_params(p, num_in, num_mid, stride):
    """Fold BN into the weights, pad channels to 128 and cast to bf16 — done
    ONCE, outside the jitted forward (hoisted per perf review)."""
    num_out = num_mid * 4
    Cin_p = _round_up(num_in, _LANE)
    Cmid_p = _round_up(num_mid, _LANE)
    Cout_p = _round_up(num_out, _LANE)

    q = {}
    q['w1'] = _pad_to(p['w1'] * p['s1'][None, :],
                      (Cin_p, Cmid_p)).astype(jnp.bfloat16)
    q['b1'] = _pad_to(p['b1'].astype(jnp.float32).reshape(1, -1), (1, Cmid_p))

    # OIHW -> (kh, kw, I, O), BN scale folded into output channels.
    w2 = jnp.transpose(p['w2'], (2, 3, 1, 0)) * p['s2'][None, None, None, :]
    q['w2'] = _pad_to(w2, (3, 3, Cmid_p, Cmid_p)).astype(jnp.bfloat16)
    q['b2'] = _pad_to(p['b2'].astype(jnp.float32).reshape(1, -1), (1, Cmid_p))

    q['w3'] = _pad_to(p['w3'] * p['s3'][None, :],
                      (Cmid_p, Cout_p)).astype(jnp.bfloat16)
    if 'wd' in p:
        q['wd'] = _pad_to(p['wd'] * p['sd'][None, :],
                          (Cin_p, Cout_p)).astype(jnp.bfloat16)
        q['b3'] = _pad_to((p['b3'] + p['bd']).astype(jnp.float32).reshape(1, -1),
                          (1, Cout_p))
    else:
        q['b3'] = _pad_to(p['b3'].astype(jnp.float32).reshape(1, -1),
                          (1, Cout_p))
    return q


# -----------------------------------------------------------------------------
# Bottleneck forward (Pallas path)
# -----------------------------------------------------------------------------
def bottleneck_forward_nhwc(x_nhwc, q, stride):
    """x_nhwc: (N, H, W, Cin_p) bf16, channel-padded. Returns NHWC bf16."""
    N, H, W, Cin_p = x_nhwc.shape
    Cmid_p = q['w1'].shape[1]
    Cout_p = q['w3'].shape[1]

    x_flat = x_nhwc.reshape(N * H * W, Cin_p)

    # conv1 (1x1) + bn1 + relu   (BN scale pre-folded into weight)
    h1 = fused_matmul_bias_act([(x_flat, q['w1'])], q['b1'], relu=True)
    h1 = h1[:N * H * W].reshape(N, H, W, Cmid_p)

    # conv2 (3x3, stride, pad=1) + bn2 + relu : in-kernel 9-tap reduction
    h2 = conv3x3_bn_relu(h1, q['w2'], q['b2'], stride)
    _, Ho, Wo, _ = h2.shape
    h2_flat = h2.reshape(N * Ho * Wo, Cmid_p)

    # conv3 (1x1) + bn3 + residual + relu
    if 'wd' in q:
        # Downsample branch fused in the same kernel: two (x, w) operands share
        # one K-reduction grid axis and one f32 accumulator; bias = b3 + bd.
        # TODO(synk): fold the strided identity gather into the kernel index_map
        #             instead of materializing xd in HBM.
        xd = x_nhwc[:, ::stride, ::stride, :].reshape(N * Ho * Wo, Cin_p)
        out = fused_matmul_bias_act([(h2_flat, q['w3']), (xd, q['wd'])],
                                    q['b3'], relu=True)
    else:
        out = fused_matmul_bias_act([(h2_flat, q['w3'])], q['b3'],
                                    residual=x_flat, relu=True)
    return out[:N * Ho * Wo].reshape(N, Ho, Wo, Cout_p)


def bottleneck_forward(x_nchw, q, stride, num_out):
    # TODO(synk): in a full ResNet keep activations NHWC/bf16 end-to-end and do
    #             the NCHW<->NHWC + f32 conversion once at the network boundary;
    #             this shim exists only so the test can compare against the
    #             NCHW f32 reference.
    N, Cin, H, W = x_nchw.shape
    Cin_p = _round_up(Cin, _LANE)
    x = jnp.transpose(x_nchw, (0, 2, 3, 1))
    x = _pad_to(x, (N, H, W, Cin_p)).astype(jnp.bfloat16)
    out = bottleneck_forward_nhwc(x, q, stride)
    out = out[..., :num_out].astype(jnp.float32)
    return jnp.transpose(out, (0, 3, 1, 2))


# -----------------------------------------------------------------------------
# Pure-JAX reference (f32 lax.conv) for verification
# -----------------------------------------------------------------------------
def ref_forward(x_nchw, p, stride):
    def conv(x, w, s, pad):
        return jax.lax.conv_general_dilated(
            x, w, (s, s), pad, dimension_numbers=('NCHW', 'OIHW', 'NCHW'))

    def bn(x, scale, bias):
        return x * scale[None, :, None, None] + bias[None, :, None, None]

    relu = jax.nn.relu
    Cin = x_nchw.shape[1]
    Cout = p['w3'].shape[1]

    w1 = jnp.transpose(p['w1'])[:, :, None, None]
    w3 = jnp.transpose(p['w3'])[:, :, None, None]

    out = relu(bn(conv(x_nchw, w1, 1, [(0, 0), (0, 0)]), p['s1'], p['b1']))
    out = relu(bn(conv(out, p['w2'], stride, [(1, 1), (1, 1)]), p['s2'], p['b2']))
    out = bn(conv(out, w3, 1, [(0, 0), (0, 0)]), p['s3'], p['b3'])

    if stride != 1 or Cin != Cout:
        wd = jnp.transpose(p['wd'])[:, :, None, None]
        identity = bn(conv(x_nchw, wd, stride, [(0, 0), (0, 0)]),
                      p['sd'], p['bd'])
    else:
        identity = x_nchw
    return relu(out + identity)


if __name__ == "__main__":
    key = jax.random.PRNGKey(0)
    N, H, W = 2, 16, 16

    configs = [
        (4, 4, 2),    # downsample branch active (num_out=16, stride=2)
        (16, 4, 1),   # identity pass-through branch (num_in == num_out)
    ]

    for num_in, num_mid, stride in configs:
        kx, kp, key = jax.random.split(key, 3)
        x = jax.random.normal(kx, (N, num_in, H, W), jnp.float32)
        params = init_params(kp, num_in, num_mid, stride)
        num_out = num_mid * 4

        # Hoisted weight prep: BN folding + padding + bf16 cast, outside jit.
        q = prepare_params(params, num_in, num_mid, stride)

        fwd = jax.jit(functools.partial(bottleneck_forward,
                                        stride=stride, num_out=num_out))
        out = jax.block_until_ready(fwd(x, q))
        ref = jax.block_until_ready(ref_forward(x, params, stride))

        Ho = (H + 2 - 3) // stride + 1
        assert out.shape == (N, num_out, Ho, Ho), out.shape
        max_err = float(jnp.max(jnp.abs(out - ref)))
        # bf16 operands vs f32 reference -> loosened tolerance
        assert jnp.allclose(out, ref, rtol=5e-2, atol=5e-2), max_err

    print("KERNEL_OK")
</pallas_src>

<mosaic_0001>
module attributes {stable_mosaic.version = 11 : i64} {
  func.func @_matmul_nk1_kernel(%arg0: i32, %arg1: i32, %arg2: memref<256x128xbf16, #tpu.memory_space<vmem>>, %arg3: memref<128x128xbf16, #tpu.memory_space<vmem>>, %arg4: memref<1x128xf32, #tpu.memory_space<vmem>>, %arg5: memref<256x128xbf16, #tpu.memory_space<vmem>>) attributes {dimension_semantics = [#tpu.dimension_semantics<parallel>, #tpu.dimension_semantics<parallel>], iteration_bounds = array<i64: 2, 1>, scalar_prefetch = 0 : i64, scratch_operands = 0 : i64, tpu.core_type = #tpu.core_type<tc>, window_params = [{transform_indices = @transform_0, window_bounds = array<i64: 256, 128>}, {transform_indices = @transform_1, window_bounds = array<i64: 128, 128>}, {transform_indices = @transform_2, window_bounds = array<i64: 1, 128>}, {transform_indices = @transform_3, window_bounds = array<i64: 256, 128>}]} {
    %c0 = arith.constant 0 : index
    %c0_0 = arith.constant 0 : index
    %0 = vector.load %arg2[%c0, %c0_0] : memref<256x128xbf16, #tpu.memory_space<vmem>>, vector<256x128xbf16>
    %c0_1 = arith.constant 0 : index
    %c0_2 = arith.constant 0 : index
    %1 = vector.load %arg3[%c0_1, %c0_2] : memref<128x128xbf16, #tpu.memory_space<vmem>>, vector<128x128xbf16>
    %cst = arith.constant dense<0.000000e+00> : vector<256x128xf32>
    %2 = tpu.matmul %0, %1, %cst {dimension_numbers = #tpu.dot_dimension_numbers<[1], [0], [0], [1], [0, 0, 1, 1], [], []>} : vector<256x128xbf16>, vector<128x128xbf16>, vector<256x128xf32> -> vector<256x128xf32>
    %c0_3 = arith.constant 0 : index
    %c0_4 = arith.constant 0 : index
    %3 = vector.load %arg4[%c0_3, %c0_4] : memref<1x128xf32, #tpu.memory_space<vmem>>, vector<1x128xf32>
    %4 = vector.broadcast %3 : vector<1x128xf32> to vector<256x128xf32>
    %5 = arith.addf %2, %4 : vector<256x128xf32>
    %cst_5 = arith.constant 0.000000e+00 : f32
    %6 = vector.broadcast %cst_5 : f32 to vector<256x128xf32>
    %7 = arith.maximumf %5, %6 : vector<256x128xf32>
    %8 = arith.truncf %7 : vector<256x128xf32> to vector<256x128xbf16>
    %c0_6 = arith.constant 0 : index
    %c0_7 = arith.constant 0 : index
    %9 = vector.load %arg5[%c0_6, %c0_7] : memref<256x128xbf16, #tpu.memory_space<vmem>>, vector<256x128xbf16>
    tpu.vector_store %arg5[%c0_6, %c0_7], %8 {strides = array<i32>} : memref<256x128xbf16, #tpu.memory_space<vmem>>, vector<256x128xbf16>,
    return
  }
  func.func @transform_0(%arg0: i32, %arg1: i32) -> (i32, i32) {
    %c0_i32 = arith.constant 0 : i32
    %c0_i32_0 = arith.constant 0 : i32
    return %arg0, %c0_i32 : i32, i32
  }
  func.func @transform_1(%arg0: i32, %arg1: i32) -> (i32, i32) {
    %c0_i32 = arith.constant 0 : i32
    %c0_i32_0 = arith.constant 0 : i32
    return %c0_i32, %arg1 : i32, i32
  }
  func.func @transform_2(%arg0: i32, %arg1: i32) -> (i32, i32) {
    %c0_i32 = arith.constant 0 : i32
    %c0_i32_0 = arith.constant 0 : i32
    return %c0_i32, %arg1 : i32, i32
  }
  func.func @transform_3(%arg0: i32, %arg1: i32) -> (i32, i32) {
    %c0_i32 = arith.constant 0 : i32
    return %arg0, %arg1 : i32, i32
  }
}

module attributes {stable_mosaic.version = 11 : i64} {
  func.func @_conv3x3_kernel(%arg0: i32, %arg1: i32, %arg2: memref<4x9x9x128xbf16, #tpu.memory_space<vmem>>, %arg3: memref<3x3x128x128xbf16, #tpu.memory_space<vmem>>, %arg4: memref<1x128xf32, #tpu.memory_space<vmem>>, %arg5: memref<1x64x128xbf16, #tpu.memory_space<vmem>>) attributes {dimension_semantics = [#tpu.dimension_semantics<parallel>, #tpu.dimension_semantics<parallel>], iteration_bounds = array<i64: 2, 1>, scalar_prefetch = 0 : i64, scratch_operands = 0 : i64, tpu.core_type = #tpu.core_type<tc>, window_params = [{transform_indices = @transform_0, window_bounds = array<i64: 4, 9, 9, 128>}, {transform_indices = @transform_1, window_bounds = array<i64: 3, 3, 128, 128>}, {transform_indices = @transform_2, window_bounds = array<i64: 1, 128>}, {transform_indices = @transform_3, window_bounds = array<i64: 1, 64, 128>}]} {
    %c0 = arith.constant 0 : index
    %c0_0 = arith.constant 0 : index
    %c0_1 = arith.constant 0 : index
    %c0_2 = arith.constant 0 : index
    %0 = vector.load %arg2[%c0, %c0_0, %c0_1, %c0_2] : memref<4x9x9x128xbf16, #tpu.memory_space<vmem>>, vector<1x8x8x128xbf16>
    %1 = vector.shape_cast %0 : vector<1x8x8x128xbf16> to vector<8x8x128xbf16>
    %2 = vector.shape_cast %1 : vector<8x8x128xbf16> to vector<64x128xbf16>
    %c0_3 = arith.constant 0 : index
    %c0_4 = arith.constant 0 : index
    %c0_5 = arith.constant 0 : index
    %c0_6 = arith.constant 0 : index
    %3 = vector.load %arg3[%c0_3, %c0_4, %c0_5, %c0_6] : memref<3x3x128x128xbf16, #tpu.memory_space<vmem>>, vector<1x1x128x128xbf16>
    %4 = vector.shape_cast %3 : vector<1x1x128x128xbf16> to vector<128x128xbf16>
    %cst = arith.constant dense<0.000000e+00> : vector<64x128xf32>
    %5 = tpu.matmul %2, %4, %cst {dimension_numbers = #tpu.dot_dimension_numbers<[1], [0], [0], [1], [0, 0, 1, 1], [], []>} : vector<64x128xbf16>, vector<128x128xbf16>, vector<64x128xf32> -> vector<64x128xf32>
    %c1 = arith.constant 1 : index
    %c0_7 = arith.constant 0 : index
    %c0_8 = arith.constant 0 : index
    %c0_9 = arith.constant 0 : index
    %6 = vector.load %arg2[%c1, %c0_7, %c0_8, %c0_9] : memref<4x9x9x128xbf16, #tpu.memory_space<vmem>>, vector<1x8x8x128xbf16>
    %7 = vector.shape_cast %6 : vector<1x8x8x128xbf16> to vector<8x8x128xbf16>
    %8 = vector.shape_cast %7 : vector<8x8x128xbf16> to vector<64x128xbf16>
    %c0_10 = arith.constant 0 : index
    %c1_11 = arith.constant 1 : index
    %c0_12 = arith.constant 0 : index
    %c0_13 = arith.constant 0 : index
    %9 = vector.load %arg3[%c0_10, %c1_11, %c0_12, %c0_13] : memref<3x3x128x128xbf16, #tpu.memory_space<vmem>>, vector<1x1x128x128xbf16>
    %10 = vector.shape_cast %9 : vector<1x1x128x128xbf16> to vector<128x128xbf16>
    %cst_14 = arith.constant dense<0.000000e+00> : vector<64x128xf32>
    %11 = tpu.matmul %8, %10, %cst_14 {dimension_numbers = #tpu.dot_dimension_numbers<[1], [0], [0], [1], [0, 0, 1, 1], [], []>} : vector<64x128xbf16>, vector<128x128xbf16>, vector<64x128xf32> -> vector<64x128xf32>
    %12 = arith.addf %5, %11 : vector<64x128xf32>
    %c0_15 = arith.constant 0 : index
    %c0_16 = arith.constant 0 : index
    %c1_17 = arith.constant 1 : index
    %c0_18 = arith.constant 0 : index
    %13 = vector.load %arg2[%c0_15, %c0_16, %c1_17, %c0_18] : memref<4x9x9x128xbf16, #tpu.memory_space<vmem>>, vector<1x8x8x128xbf16>
    %14 = vector.shape_cast %13 : vector<1x8x8x128xbf16> to vector<8x8x128xbf16>
    %15 = vector.shape_cast %14 : vector<8x8x128xbf16> to vector<64x128xbf16>
    %c0_19 = arith.constant 0 : index
    %c2 = arith.constant 2 : index
    %c0_20 = arith.constant 0 : index
    %c0_21 = arith.constant 0 : index
    %16 = vector.load %arg3[%c0_19, %c2, %c0_20, %c0_21] : memref<3x3x128x128xbf16, #tpu.memory_space<vmem>>, vector<1x1x128x128xbf16>
    %17 = vector.shape_cast %16 : vector<1x1x128x128xbf16> to vector<128x128xbf16>
    %cst_22 = arith.constant dense<0.000000e+00> : vector<64x128xf32>
    %18 = tpu.matmul %15, %17, %cst_22 {dimension_numbers = #tpu.dot_dimension_numbers<[1], [0], [0], [1], [0, 0, 1, 1], [], []>} : vector<64x128xbf16>, vector<128x128xbf16>, vector<64x128xf32> -> vector<64x128xf32>
    %19 = arith.addf %12, %18 : vector<64x128xf32>
    %c2_23 = arith.constant 2 : index
    %c0_24 = arith.constant 0 : index
    %c0_25 = arith.constant 0 : index
    %c0_26 = arith.constant 0 : index
    %20 = vector.load %arg2[%c2_23, %c0_24, %c0_25, %c0_26] : memref<4x9x9x128xbf16, #tpu.memory_space<vmem>>, vector<1x8x8x128xbf16>
    %21 = vector.shape_cast %20 : vector<1x8x8x128xbf16> to vector<8x8x128xbf16>
    %22 = vector.shape_cast %21 : vector<8x8x128xbf16> to vector<64x128xbf16>
    %c1_27 = arith.constant 1 : index
    %c0_28 = arith.constant 0 : index
    %c0_29 = arith.constant 0 : index
    %c0_30 = arith.constant 0 : index
    %23 = vector.load %arg3[%c1_27, %c0_28, %c0_29, %c0_30] : memref<3x3x128x128xbf16, #tpu.memory_space<vmem>>, vector<1x1x128x128xbf16>
    %24 = vector.shape_cast %23 : vector<1x1x128x128xbf16> to vector<128x128xbf16>
    %cst_31 = arith.constant dense<0.000000e+00> : vector<64x128xf32>
    %25 = tpu.matmul %22, %24, %cst_31 {dimension_numbers = #tpu.dot_dimension_numbers<[1], [0], [0], [1], [0, 0, 1, 1], [], []>} : vector<64x128xbf16>, vector<128x128xbf16>, vector<64x128xf32> -> vector<64x128xf32>
    %26 = arith.addf %19, %25 : vector<64x128xf32>
    %c3 = arith.constant 3 : index
    %c0_32 = arith.constant 0 : index
    %c0_33 = arith.constant 0 : index
    %c0_34 = arith.constant 0 : index
    %27 = vector.load %arg2[%c3, %c0_32, %c0_33, %c0_34] : memref<4x9x9x128xbf16, #tpu.memory_space<vmem>>, vector<1x8x8x128xbf16>
    %28 = vector.shape_cast %27 : vector<1x8x8x128xbf16> to vector<8x8x128xbf16>
    %29 = vector.shape_cast %28 : vector<8x8x128xbf16> to vector<64x128xbf16>
    %c1_35 = arith.constant 1 : index
    %c1_36 = arith.constant 1 : index
    %c0_37 = arith.constant 0 : index
    %c0_38 = arith.constant 0 : index
    %30 = vector.load %arg3[%c1_35, %c1_36, %c0_37, %c0_38] : memref<3x3x128x128xbf16, #tpu.memory_space<vmem>>, vector<1x1x128x128xbf16>
    %31 = vector.shape_cast %30 : vector<1x1x128x128xbf16> to vector<128x128xbf16>
    %cst_39 = arith.constant dense<0.000000e+00> : vector<64x128xf32>
    %32 = tpu.matmul %29, %31, %cst_39 {dimension_numbers = #tpu.dot_dimension_numbers<[1], [0], [0], [1], [0, 0, 1, 1], [], []>} : vector<64x128xbf16>, vector<128x128xbf16>, vector<64x128xf32> -> vector<64x128xf32>
    %33 = arith.addf %26, %32 : vector<64x128xf32>
    %c2_40 = arith.constant 2 : index
    %c0_41 = arith.constant 0 : index
    %c1_42 = arith.constant 1 : index
    %c0_43 = arith.constant 0 : index
    %34 = vector.load %arg2[%c2_40, %c0_41, %c1_42, %c0_43] : memref<4x9x9x128xbf16, #tpu.memory_space<vmem>>, vector<1x8x8x128xbf16>
    %35 = vector.shape_cast %34 : vector<1x8x8x128xbf16> to vector<8x8x128xbf16>
    %36 = vector.shape_cast %35 : vector<8x8x128xbf16> to vector<64x128xbf16>
    %c1_44 = arith.constant 1 : index
    %c2_45 = arith.constant 2 : index
    %c0_46 = arith.constant 0 : index
    %c0_47 = arith.constant 0 : index
    %37 = vector.load %arg3[%c1_44, %c2_45, %c0_46, %c0_47] : memref<3x3x128x128xbf16, #tpu.memory_space<vmem>>, vector<1x1x128x128xbf16>
    %38 = vector.shape_cast %37 : vector<1x1x128x128xbf16> to vector<128x128xbf16>
    %cst_48 = arith.constant dense<0.000000e+00> : vector<64x128xf32>
    %39 = tpu.matmul %36, %38, %cst_48 {dimension_numbers = #tpu.dot_dimension_numbers<[1], [0], [0], [1], [0, 0, 1, 1], [], []>} : vector<64x128xbf16>, vector<128x128xbf16>, vector<64x128xf32> -> vector<64x128xf32>
    %40 = arith.addf %33, %39 : vector<64x128xf32>
    %c0_49 = arith.constant 0 : index
    %c1_50 = arith.constant 1 : index
    %c0_51 = arith.constant 0 : index
    %c0_52 = arith.constant 0 : index
    %41 = vector.load %arg2[%c0_49, %c1_50, %c0_51, %c0_52] : memref<4x9x9x128xbf16, #tpu.memory_space<vmem>>, vector<1x8x8x128xbf16>
    %42 = vector.shape_cast %41 : vector<1x8x8x128xbf16> to vector<8x8x128xbf16>
    %43 = vector.shape_cast %42 : vector<8x8x128xbf16> to vector<64x128xbf16>
    %c2_53 = arith.constant 2 : index
    %c0_54 = arith.constant 0 : index
    %c0_55 = arith.constant 0 : index
    %c0_56 = arith.constant 0 : index
    %44 = vector.load %arg3[%c2_53, %c0_54, %c0_55, %c0_56] : memref<3x3x128x128xbf16, #tpu.memory_space<vmem>>, vector<1x1x128x128xbf16>
    %45 = vector.shape_cast %44 : vector<1x1x128x128xbf16> to vector<128x128xbf16>
    %cst_57 = arith.constant dense<0.000000e+00> : vector<64x128xf32>
    %46 = tpu.matmul %43, %45, %cst_57 {dimension_numbers = #tpu.dot_dimension_numbers<[1], [0], [0], [1], [0, 0, 1, 1], [], []>} : vector<64x128xbf16>, vector<128x128xbf16>, vector<64x128xf32> -> vector<64x128xf32>
    %47 = arith.addf %40, %46 : vector<64x128xf32>
    %c1_58 = arith.constant 1 : index
    %c1_59 = arith.constant 1 : index
    %c0_60 = arith.constant 0 : index
    %c0_61 = arith.constant 0 : index
    %48 = vector.load %arg2[%c1_58, %c1_59, %c0_60, %c0_61] : memref<4x9x9x128xbf16, #tpu.memory_space<vmem>>, vector<1x8x8x128xbf16>
    %49 = vector.shape_cast %48 : vector<1x8x8x128xbf16> to vector<8x8x128xbf16>
    %50 = vector.shape_cast %49 : vector<8x8x128xbf16> to vector<64x128xbf16>
    %c2_62 = arith.constant 2 : index
    %c1_63 = arith.constant 1 : index
    %c0_64 = arith.constant 0 : index
    %c0_65 = arith.constant 0 : index
    %51 = vector.load %arg3[%c2_62, %c1_63, %c0_64, %c0_65] : memref<3x3x128x128xbf16, #tpu.memory_space<vmem>>, vector<1x1x128x128xbf16>
    %52 = vector.shape_cast %51 : vector<1x1x128x128xbf16> to vector<128x128xbf16>
    %cst_66 = arith.constant dense<0.000000e+00> : vector<64x128xf32>
    %53 = tpu.matmul %50, %52, %cst_66 {dimension_numbers = #tpu.dot_dimension_numbers<[1], [0], [0], [1], [0, 0, 1, 1], [], []>} : vector<64x128xbf16>, vector<128x128xbf16>, vector<64x128xf32> -> vector<64x128xf32>
    %54 = arith.addf %47, %53 : vector<64x128xf32>
    %c0_67 = arith.constant 0 : index
    %c1_68 = arith.constant 1 : index
    %c1_69 = arith.constant 1 : index
    %c0_70 = arith.constant 0 : index
    %55 = vector.load %arg2[%c0_67, %c1_68, %c1_69, %c0_70] : memref<4x9x9x128xbf16, #tpu.memory_space<vmem>>, vector<1x8x8x128xbf16>
    %56 = vector.shape_cast %55 : vector<1x8x8x128xbf16> to vector<8x8x128xbf16>
    %57 = vector.shape_cast %56 : vector<8x8x128xbf16> to vector<64x128xbf16>
    %c2_71 = arith.constant 2 : index
    %c2_72 = arith.constant 2 : index
    %c0_73 = arith.constant 0 : index
    %c0_74 = arith.constant 0 : index
    %58 = vector.load %arg3[%c2_71, %c2_72, %c0_73, %c0_74] : memref<3x3x128x128xbf16, #tpu.memory_space<vmem>>, vector<1x1x128x128xbf16>
    %59 = vector.shape_cast %58 : vector<1x1x128x128xbf16> to vector<128x128xbf16>
    %cst_75 = arith.constant dense<0.000000e+00> : vector<64x128xf32>
    %60 = tpu.matmul %57, %59, %cst_75 {dimension_numbers = #tpu.dot_dimension_numbers<[1], [0], [0], [1], [0, 0, 1, 1], [], []>} : vector<64x128xbf16>, vector<128x128xbf16>, vector<64x128xf32> -> vector<64x128xf32>
    %61 = arith.addf %54, %60 : vector<64x128xf32>
    %c0_76 = arith.constant 0 : index
    %c0_77 = arith.constant 0 : index
    %62 = vector.load %arg4[%c0_76, %c0_77] : memref<1x128xf32, #tpu.memory_space<vmem>>, vector<1x128xf32>
    %63 = vector.broadcast %62 : vector<1x128xf32> to vector<64x128xf32>
    %64 = arith.addf %61, %63 : vector<64x128xf32>
    %cst_78 = arith.constant 0.000000e+00 : f32
    %65 = vector.broadcast %cst_78 : f32 to vector<64x128xf32>
    %66 = arith.maximumf %64, %65 : vector<64x128xf32>
    %67 = arith.truncf %66 : vector<64x128xf32> to vector<64x128xbf16>
    %c0_79 = arith.constant 0 : index
    %c0_80 = arith.constant 0 : index
    %c0_81 = arith.constant 0 : index
    %68 = vector.load %arg5[%c0_79, %c0_80, %c0_81] : memref<1x64x128xbf16, #tpu.memory_space<vmem>>, vector<1x64x128xbf16>
    %69 = vector.shape_cast %68 : vector<1x64x128xbf16> to vector<64x128xbf16>
    %70 = vector.shape_cast %67 : vector<64x128xbf16> to vector<1x64x128xbf16>
    tpu.vector_store %arg5[%c0_79, %c0_80, %c0_81], %70 {strides = array<i32>} : memref<1x64x128xbf16, #tpu.memory_space<vmem>>, vector<1x64x128xbf16>,
    return
  }
  func.func @transform_0(%arg0: i32, %arg1: i32) -> (i32, i32, i32, i32) {
    %c0_i32 = arith.constant 0 : i32
    %c0_i32_0 = arith.constant 0 : i32
    %c0_i32_1 = arith.constant 0 : i32
    %c0_i32_2 = arith.constant 0 : i32
    return %arg0, %c0_i32, %c0_i32_0, %c0_i32_1 : i32, i32, i32, i32
  }
  func.func @transform_1(%arg0: i32, %arg1: i32) -> (i32, i32, i32, i32) {
    %c0_i32 = arith.constant 0 : i32
    %c0_i32_0 = arith.constant 0 : i32
    %c0_i32_1 = arith.constant 0 : i32
    %c0_i32_2 = arith.constant 0 : i32
    return %c0_i32, %c0_i32_0, %c0_i32_1, %arg1 : i32, i32, i32, i32
  }
  func.func @transform_2(%arg0: i32, %arg1: i32) -> (i32, i32) {
    %c0_i32 = arith.constant 0 : i32
    %c0_i32_0 = arith.constant 0 : i32
    return %c0_i32, %arg1 : i32, i32
  }
  func.func @transform_3(%arg0: i32, %arg1: i32) -> (i32, i32, i32) {
    %c0_i32 = arith.constant 0 : i32
    %c0_i32_0 = arith.constant 0 : i32
    return %arg0, %c0_i32, %arg1 : i32, i32, i32
  }
}

module attributes {stable_mosaic.version = 11 : i64} {
  func.func @_matmul_multi_kernel(%arg0: i32, %arg1: i32, %arg2: i32, %arg3: memref<128x128xbf16, #tpu.memory_space<vmem>>, %arg4: memref<128x128xbf16, #tpu.memory_space<vmem>>, %arg5: memref<128x128xbf16, #tpu.memory_space<vmem>>, %arg6: memref<128x128xbf16, #tpu.memory_space<vmem>>, %arg7: memref<1x128xf32, #tpu.memory_space<vmem>>, %arg8: memref<128x128xbf16, #tpu.memory_space<vmem>>, %arg9: memref<128x128xf32, #tpu.memory_space<vmem>>) attributes {dimension_semantics = [#tpu.dimension_semantics<parallel>, #tpu.dimension_semantics<parallel>, #tpu.dimension_semantics<arbitrary>], iteration_bounds = array<i64: 1, 1, 2>, scalar_prefetch = 0 : i64, scratch_operands = 1 : i64, tpu.core_type = #tpu.core_type<tc>, window_params = [{transform_indices = @transform_0, window_bounds = array<i64: 128, 128>}, {transform_indices = @transform_1, window_bounds = array<i64: 128, 128>}, {transform_indices = @transform_2, window_bounds = array<i64: 128, 128>}, {transform_indices = @transform_3, window_bounds = array<i64: 128, 128>}, {transform_indices = @transform_4, window_bounds = array<i64: 1, 128>}, {transform_indices = @transform_5, window_bounds = array<i64: 128, 128>}]} {
    %c0_i32 = arith.constant 0 : i32
    %0 = arith.cmpi eq, %arg2, %c0_i32 : i32
    %1 = arith.extui %0 : i1 to i32
    %c0_i32_0 = arith.constant 0 : i32
    %2 = arith.cmpi ne, %1, %c0_i32_0 : i32
    scf.if %2 {
      %cst = arith.constant 0.000000e+00 : f32
      %16 = vector.broadcast %cst : f32 to vector<128x128xf32>
      %c0 = arith.constant 0 : index
      %c0_7 = arith.constant 0 : index
      %17 = vector.load %arg9[%c0, %c0_7] : memref<128x128xf32, #tpu.memory_space<vmem>>, vector<128x128xf32>
      tpu.vector_store %arg9[%c0, %c0_7], %16 {strides = array<i32>} : memref<128x128xf32, #tpu.memory_space<vmem>>, vector<128x128xf32>,
    } else {
    }
    %c0_i32_1 = arith.constant 0 : i32
    %3 = arith.cmpi sge, %arg2, %c0_i32_1 : i32
    %c1_i32 = arith.constant 1 : i32
    %4 = arith.cmpi slt, %arg2, %c1_i32 : i32
    %5 = arith.andi %3, %4 : i1
    %6 = arith.extui %5 : i1 to i32
    %c0_i32_2 = arith.constant 0 : i32
    %7 = arith.cmpi ne, %6, %c0_i32_2 : i32
    scf.if %7 {
      %c0 = arith.constant 0 : index
      %c0_7 = arith.constant 0 : index
      %16 = vector.load %arg9[%c0, %c0_7] : memref<128x128xf32, #tpu.memory_space<vmem>>, vector<128x128xf32>
      %c0_8 = arith.constant 0 : index
      %c0_9 = arith.constant 0 : index
      %17 = vector.load %arg3[%c0_8, %c0_9] : memref<128x128xbf16, #tpu.memory_space<vmem>>, vector<128x128xbf16>
      %c0_10 = arith.constant 0 : index
      %c0_11 = arith.constant 0 : index
      %18 = vector.load %arg4[%c0_10, %c0_11] : memref<128x128xbf16, #tpu.memory_space<vmem>>, vector<128x128xbf16>
      %cst = arith.constant dense<0.000000e+00> : vector<128x128xf32>
      %19 = tpu.matmul %17, %18, %cst {dimension_numbers = #tpu.dot_dimension_numbers<[1], [0], [0], [1], [0, 0, 1, 1], [], []>} : vector<128x128xbf16>, vector<128x128xbf16>, vector<128x128xf32> -> vector<128x128xf32>
      %20 = arith.addf %16, %19 : vector<128x128xf32>
      %c0_12 = arith.constant 0 : index
      %c0_13 = arith.constant 0 : index
      %21 = vector.load %arg9[%c0_12, %c0_13] : memref<128x128xf32, #tpu.memory_space<vmem>>, vector<128x128xf32>
      tpu.vector_store %arg9[%c0_12, %c0_13], %20 {strides = array<i32>} : memref<128x128xf32, #tpu.memory_space<vmem>>, vector<128x128xf32>,
    } else {
    }
    %c1_i32_3 = arith.constant 1 : i32
    %8 = arith.cmpi sge, %arg2, %c1_i32_3 : i32
    %c2_i32 = arith.constant 2 : i32
    %9 = arith.cmpi slt, %arg2, %c2_i32 : i32
    %10 = arith.andi %8, %9 : i1
    %11 = arith.extui %10 : i1 to i32
    %c0_i32_4 = arith.constant 0 : i32
    %12 = arith.cmpi ne, %11, %c0_i32_4 : i32
    scf.if %12 {
      %c0 = arith.constant 0 : index
      %c0_7 = arith.constant 0 : index
      %16 = vector.load %arg9[%c0, %c0_7] : memref<128x128xf32, #tpu.memory_space<vmem>>, vector<128x128xf32>
      %c0_8 = arith.constant 0 : index
      %c0_9 = arith.constant 0 : index
      %17 = vector.load %arg5[%c0_8, %c0_9] : memref<128x128xbf16, #tpu.memory_space<vmem>>, vector<128x128xbf16>
      %c0_10 = arith.constant 0 : index
      %c0_11 = arith.constant 0 : index
      %18 = vector.load %arg6[%c0_10, %c0_11] : memref<128x128xbf16, #tpu.memory_space<vmem>>, vector<128x128xbf16>
      %cst = arith.constant dense<0.000000e+00> : vector<128x128xf32>
      %19 = tpu.matmul %17, %18, %cst {dimension_numbers = #tpu.dot_dimension_numbers<[1], [0], [0], [1], [0, 0, 1, 1], [], []>} : vector<128x128xbf16>, vector<128x128xbf16>, vector<128x128xf32> -> vector<128x128xf32>
      %20 = arith.addf %16, %19 : vector<128x128xf32>
      %c0_12 = arith.constant 0 : index
      %c0_13 = arith.constant 0 : index
      %21 = vector.load %arg9[%c0_12, %c0_13] : memref<128x128xf32, #tpu.memory_space<vmem>>, vector<128x128xf32>
      tpu.vector_store %arg9[%c0_12, %c0_13], %20 {strides = array<i32>} : memref<128x128xf32, #tpu.memory_space<vmem>>, vector<128x128xf32>,
    } else {
    }
    %c1_i32_5 = arith.constant 1 : i32
    %13 = arith.cmpi eq, %arg2, %c1_i32_5 : i32
    %14 = arith.extui %13 : i1 to i32
    %c0_i32_6 = arith.constant 0 : i32
    %15 = arith.cmpi ne, %14, %c0_i32_6 : i32
    scf.if %15 {
      %c0 = arith.constant 0 : index
      %c0_7 = arith.constant 0 : index
      %16 = vector.load %arg9[%c0, %c0_7] : memref<128x128xf32, #tpu.memory_space<vmem>>, vector<128x128xf32>
      %c0_8 = arith.constant 0 : index
      %c0_9 = arith.constant 0 : index
      %17 = vector.load %arg7[%c0_8, %c0_9] : memref<1x128xf32, #tpu.memory_space<vmem>>, vector<1x128xf32>
      %18 = vector.broadcast %17 : vector<1x128xf32> to vector<128x128xf32>
      %19 = arith.addf %16, %18 : vector<128x128xf32>
      %cst = arith.constant 0.000000e+00 : f32
      %20 = vector.broadcast %cst : f32 to vector<128x128xf32>
      %21 = arith.maximumf %19, %20 : vector<128x128xf32>
      %22 = arith.truncf %21 : vector<128x128xf32> to vector<128x128xbf16>
      %c0_10 = arith.constant 0 : index
      %c0_11 = arith.constant 0 : index
      %23 = vector.load %arg8[%c0_10, %c0_11] : memref<128x128xbf16, #tpu.memory_space<vmem>>, vector<128x128xbf16>
      tpu.vector_store %arg8[%c0_10, %c0_11], %22 {strides = array<i32>} : memref<128x128xbf16, #tpu.memory_space<vmem>>, vector<128x128xbf16>,
    } else {
    }
    return
  }
  func.func @transform_0(%arg0: i32, %arg1: i32, %arg2: i32) -> (i32, i32) {
    %c0_i32 = arith.constant 0 : i32
    %0 = arith.subi %arg2, %c0_i32 : i32
    %c0_i32_0 = arith.constant 0 : i32
    %c0_i32_1 = arith.constant 0 : i32
    %1 = arith.maxsi %c0_i32_0, %0 : i32
    %2 = arith.minsi %c0_i32_1, %1 : i32
    %c0_i32_2 = arith.constant 0 : i32
    return %arg0, %2 : i32, i32
  }
  func.func @transform_1(%arg0: i32, %arg1: i32, %arg2: i32) -> (i32, i32) {
    %c0_i32 = arith.constant 0 : i32
    %0 = arith.subi %arg2, %c0_i32 : i32
    %c0_i32_0 = arith.constant 0 : i32
    %c0_i32_1 = arith.constant 0 : i32
    %1 = arith.maxsi %c0_i32_0, %0 : i32
    %2 = arith.minsi %c0_i32_1, %1 : i32
    %c0_i32_2 = arith.constant 0 : i32
    return %2, %arg1 : i32, i32
  }
  func.func @transform_2(%arg0: i32, %arg1: i32, %arg2: i32) -> (i32, i32) {
    %c1_i32 = arith.constant 1 : i32
    %0 = arith.subi %arg2, %c1_i32 : i32
    %c0_i32 = arith.constant 0 : i32
    %c0_i32_0 = arith.constant 0 : i32
    %1 = arith.maxsi %c0_i32, %0 : i32
    %2 = arith.minsi %c0_i32_0, %1 : i32
    %c0_i32_1 = arith.constant 0 : i32
    return %arg0, %2 : i32, i32
  }
  func.func @transform_3(%arg0: i32, %arg1: i32, %arg2: i32) -> (i32, i32) {
    %c1_i32 = arith.constant 1 : i32
    %0 = arith.subi %arg2, %c1_i32 : i32
    %c0_i32 = arith.constant 0 : i32
    %c0_i32_0 = arith.constant 0 : i32
    %1 = arith.maxsi %c0_i32, %0 : i32
    %2 = arith.minsi %c0_i32_0, %1 : i32
    %c0_i32_1 = arith.constant 0 : i32
    return %2, %arg1 : i32, i32
  }
  func.func @transform_4(%arg0: i32, %arg1: i32, %arg2: i32) -> (i32, i32) {
    %c0_i32 = arith.constant 0 : i32
    %c0_i32_0 = arith.constant 0 : i32
    return %c0_i32, %arg1 : i32, i32
  }
  func.func @transform_5(%arg0: i32, %arg1: i32, %arg2: i32) -> (i32, i32) {
    %c0_i32 = arith.constant 0 : i32
    return %arg0, %arg1 : i32, i32
  }
}

</mosaic_0001>

<bundles_post_ra>
// kernel: bottleneck_forward.3
= control target key start
LH: loop header
LB: loop body
LE: loop exit
PB: predicated region body
PF: predicated region fallthrough
CT: control target
= control target key end

     0   :  { %s1257_s12 = smov 0   ;;  %s1259_s13 = smov 0   ;;  %s1394_s0 = inlined_call_operand.vmem [shape: bf16[512,128], index: 0, kind: input, shape index: {}]   ;;  %s1395_s1 = inlined_call_operand.vmem [shape: bf16[128,128], index: 1, kind: input, shape index: {}]   ;;  %s1396_s2 = inlined_call_operand.vmem [shape: f32[1,128], index: 2, kind: input, shape index: {}]   ;;  %s1397_s3 = inlined_call_operand.vmem [shape: bf16[512,128], index: 3, kind: output, shape index: {}]  }
   0x1   :  { %s1261_s14 = smov 0  }
   0x2 LB: > { %s25_s15 = sadd.s32 1, %s1231_s13  ;;  %p886_p0 = scmp.ge.s32.totalorder %s1235_s14, 1  ;;  %s1235_s14 = sphi %s1261_s14, %s13_s14   ;;  %s1231_s13 = sphi %s1259_s13, %s1399_s13   ;;  %s1227_s12 = sphi %s1257_s12, %s1398_s12  }
   0x3   : > { %p27_p1 = scmp.ge.s32.totalorder %s25_s15, 2  ;;  %p169_p2 = scmp.lt.s32.totalorder %s1235_s14, 3 }
   0x5   : > { %s1401_s15 = smov (%p27_p1, %s25_s15), 0  ;;  %p170_p3 = pnand %p886_p0, %p169_p2 }
   0x6   : > { %v1189_v0 = vld [vmem:[%s1395_s1] sm:$0xff] (!%p170_p3)   ;;  %s887_s18 = sshll.u32 (!%p170_p3), %s1227_s12, 5  ;;  %v1190_v1 = vld [vmem:[%s1395_s1 + $0x8] sm:$0xff] (!%p170_p3)   ;;  %v1191_v2 = vld [vmem:[%s1395_s1 + $0x10] sm:$0xff] (!%p170_p3)  }
   0x7   : > { %173 = sbr.rel (%p170_p3) target bundleno = 285 (0x11d), region = 32  ;;  %p204_p4 = scmp.lt.s32.totalorder (!%p170_p3), %s887_s18, 63  ;;  %1101 = vmatprep.subr.bf16.mxu0 (!%p170_p3), %v1189_v0  ;;  %1149 = vmatprep.subr.bf16.mxu1 (!%p170_p3), %v1189_v0  ;;  %v1192_v3 = vld [vmem:[%s1395_s1 + $0x18] sm:$0xff] (!%p170_p3)   ;;  %v1193_v6 = vld [vmem:[%s1395_s1 + $0x20] sm:$0xff] (!%p170_p3)   ;;  %v1194_v7 = vld [vmem:[%s1395_s1 + $0x28] sm:$0xff] (!%p170_p3)  }
   0x8   : > { %1102 = vmatpush3.bf16.msra.mxu0 (!%p170_p3), %v1189_v0  ;;  %1157 = vmatpush3.bf16.msra.mxu1 (!%p170_p3), %v1189_v0  ;;  %v1195_v8 = vld [vmem:[%s1395_s1 + $0x30] sm:$0xff] (!%p170_p3)   ;;  %v1196_v9 = vld [vmem:[%s1395_s1 + $0x38] sm:$0xff] (!%p170_p3)   ;;  %v1328_v24 = vld [vmem:[%s1396_s2] ss:$0 sm:$0xff] (!%p170_p3) }
   0x9   : > { %1103 = vmatprep.subr.bf16.mxu0 (!%p170_p3), %v1190_v1  ;;  %1150 = vmatprep.subr.bf16.mxu1 (!%p170_p3), %v1190_v1 }
   0xc   : > { %1104 = vmatpush3.bf16.msra.mxu0 (!%p170_p3), %v1190_v1  ;;  %1158 = vmatpush3.bf16.msra.mxu1 (!%p170_p3), %v1190_v1 }
   0xd   : > { %1105 = vmatprep.subr.bf16.mxu0 (!%p170_p3), %v1191_v2  ;;  %1151 = vmatprep.subr.bf16.mxu1 (!%p170_p3), %v1191_v2 }
   0xe   : > { %s1403_s18 = smov (!%p204_p4, %s887_s18), 63 }
   0xf   : > { %s888_s23 = sshll.u32 %s1403_s18, 2 }
  0x10   : > { %s1292_s26 = scalar_lea.vmem %s1394_s0, %s888_s23  ;;  %1106 = vmatpush3.bf16.msra.mxu0 %v1191_v2  ;;  %1159 = vmatpush3.bf16.msra.mxu1 %v1191_v2  ;;  %s1343_s17 = scalar_lea.vmem %s1397_s3, %s888_s23 }
  0x11   : > { %v1197_v4 = vld [vmem:[%s1292_s26] sm:$0xff]   ;;  %1107 = vmatprep.subr.bf16.mxu0 %v1192_v3  ;;  %1152 = vmatprep.subr.bf16.mxu1 %v1192_v3  ;;  %v1199_v10 = vld [vmem:[%s1292_s26 + $0x8] sm:$0xff]   ;;  %v1201_v12 = vld [vmem:[%s1292_s26 + $0x10] sm:$0xff]  }
  0x12   : > { %v1198_v5 = vld [vmem:[%s1292_s26 + $0x40] sm:$0xff]   ;;  %1117 = vmatprep.mubr.bf16.mxu0 %v1197_v4  ;;  %v1200_v11 = vld [vmem:[%s1292_s26 + $0x48] sm:$0xff]   ;;  %v1202_v13 = vld [vmem:[%s1292_s26 + $0x50] sm:$0xff]  }
  0x13   : > { %1133 = vmatprep.mubr.bf16.mxu1 %v1198_v5  ;;  %v1203_v14 = vld [vmem:[%s1292_s26 + $0x18] sm:$0xff]   ;;  %v1205_v16 = vld [vmem:[%s1292_s26 + $0x20] sm:$0xff]   ;;  %v1207_v18 = vld [vmem:[%s1292_s26 + $0x28] sm:$0xff]  }
  0x14   : > { %1108 = vmatpush3.bf16.msra.mxu0 %v1192_v3  ;;  %1160 = vmatpush3.bf16.msra.mxu1 %v1192_v3  ;;  %v1204_v15 = vld [vmem:[%s1292_s26 + $0x58] sm:$0xff]   ;;  %v1206_v17 = vld [vmem:[%s1292_s26 + $0x60] sm:$0xff]   ;;  %v1208_v19 = vld [vmem:[%s1292_s26 + $0x68] sm:$0xff]  }
  0x15   : > { %1109 = vmatprep.subr.bf16.mxu0 %v1193_v6  ;;  %1153 = vmatprep.subr.bf16.mxu1 %v1193_v6  ;;  %v1209_v20 = vld [vmem:[%s1292_s26 + $0x30] sm:$0xff]   ;;  %v1211_v22 = vld [vmem:[%s1292_s26 + $0x38] sm:$0xff]  }
  0x16   : > { %v1210_v21 = vld [vmem:[%s1292_s26 + $0x70] sm:$0xff]   ;;  %v1212_v23 = vld [vmem:[%s1292_s26 + $0x78] sm:$0xff]  }
  0x18   : > { %1110 = vmatpush3.bf16.msra.mxu0 %v1193_v6  ;;  %1161 = vmatpush3.bf16.msra.mxu1 %v1193_v6 }
  0x19   : > { %1111 = vmatprep.subr.bf16.mxu0 %v1194_v7  ;;  %1154 = vmatprep.subr.bf16.mxu1 %v1194_v7 }
  0x1c   : > { %1112 = vmatpush3.bf16.msra.mxu0 %v1194_v7  ;;  %1162 = vmatpush3.bf16.msra.mxu1 %v1194_v7 }
  0x1d   : > { %1113 = vmatprep.subr.bf16.mxu0 %v1195_v8  ;;  %1155 = vmatprep.subr.bf16.mxu1 %v1195_v8 }
  0x20   : > { %1114 = vmatpush3.bf16.msra.mxu0 %v1195_v8  ;;  %1163 = vmatpush3.bf16.msra.mxu1 %v1195_v8 }
  0x21   : > { %1115 = vmatprep.subr.bf16.mxu0 %v1196_v9  ;;  %1156 = vmatprep.subr.bf16.mxu1 %v1196_v9 }
  0x24   : > { %1116 = vmatpush3.bf16.msra.mxu0 %v1196_v9  ;;  %1164 = vmatpush3.bf16.msra.mxu1 %v1196_v9 }
  0x27   : > { %1118 = vmatmul.mubr.bf16.vlgmr.msra.gmra.mrb[0].mxu0 %v1199_v10  ;;  %1134 = vmatmul.mubr.bf16.vlgmr.msra.gmra.mrb[0].mxu1 %v1200_v11 }
  0x28   : > { %1121 = vmatprep.mubr.bf16.mxu0 %v1201_v12  ;;  %1137 = vmatprep.mubr.bf16.mxu1 %v1202_v13 }
  0x2f   : > { %1122 = vmatmul.mubr.bf16.gmra.mrb[4].mxu0 %v1203_v14  ;;  %1138 = vmatmul.mubr.bf16.gmra.mrb[4].mxu1 %v1204_v15 }
  0x30   : > { %1125 = vmatprep.mubr.bf16.mxu0 %v1205_v16  ;;  %1141 = vmatprep.mubr.bf16.mxu1 %v1206_v17 }
  0x37   : > { %1126 = vmatmul.mubr.bf16.gmra.mrb[8].mxu0 %v1207_v18  ;;  %1142 = vmatmul.mubr.bf16.gmra.mrb[8].mxu1 %v1208_v19 }
  0x38   : > { %1129 = vmatprep.mubr.bf16.mxu0 %v1209_v20  ;;  %1145 = vmatprep.mubr.bf16.mxu1 %v1210_v21 }
  0x3f   : > { %1130 = vmatmul.mubr.bf16.gmra.mrb[12].mxu0 %v1211_v22  ;;  %1146 = vmatmul.mubr.bf16.gmra.mrb[12].mxu1 %v1212_v23 }
  0xfa   : > { %v1119_v25 = vpop.f32.mrb[0].mxu0  ;;  %v1135_v26 = vpop.f32.mrb[0].mxu1 }
  0xfb   : > { %v468_v27 = vadd.f32 %v1119_v25, %v1328_v24  ;;  %v532_v28 = vadd.f32 %v1135_v26, %v1328_v24  ;;  %v459_v29 = vpop.f32.mrb[1].mxu0  ;;  %v523_v30 = vpop.f32.mrb[1].mxu1 }
  0xfc   : > { %v460_v31 = vadd.f32 %v1328_v24, %v459_v29  ;;  %v524_v32 = vadd.f32 %v1328_v24, %v523_v30  ;;  %v1120_v33 = vpop.f32.mrb[2].mxu0  ;;  %v1136_v34 = vpop.f32.mrb[2].mxu1 }
  0xfd   : > { %v471_v35 = vadd.f32 %v1120_v33, %v1328_v24  ;;  %v535_v36 = vadd.f32 %v1136_v34, %v1328_v24  ;;  %v462_v37 = vpop.f32.mrb[3].mxu0  ;;  %v526_v38 = vpop.f32.mrb[3].mxu1  ;;  %v588_v41 = vmax.f32 %v468_v27, 0.0  ;;  %v604_v42 = vmax.f32 %v532_v28, 0.0 }
  0xfe   : > { %v463_v39 = vadd.f32 %v1328_v24, %v462_v37  ;;  %v527_v40 = vadd.f32 %v1328_v24, %v526_v38  ;;  %v586_v45 = vmax.f32 %v460_v31, 0.0  ;;  %v602_v46 = vmax.f32 %v524_v32, 0.0 }
  0xff   : > { %v589_v43 = vmax.f32 %v471_v35, 0.0  ;;  %v605_v44 = vmax.f32 %v535_v36, 0.0 }
 0x100   : > { %v587_v47 = vmax.f32 %v463_v39, 0.0  ;;  %v603_v48 = vmax.f32 %v527_v40, 0.0 }
 0x101   : > { %v990_v49 = vpack.c.bf16 %v589_v43, %v588_v41  ;;  %v1030_v50 = vpack.c.bf16 %v605_v44, %v604_v42 }
 0x102   : > { %v985_v51 = vpack.c.bf16 %v587_v47, %v586_v45  ;;  %v1025_v52 = vpack.c.bf16 %v603_v48, %v602_v46  ;;  %v1123_v53 = vpop.f32.mrb[4].mxu0  ;;  %v1139_v54 = vpop.f32.mrb[4].mxu1 }
 0x103   : > { %1062 = vst [vmem:[%s1343_s17 + $0x8] sm:$0xff] %v990_v49   ;;  %1070 = vst [vmem:[%s1343_s17 + $0x48] sm:$0xff] %v1030_v50   ;;  %v484_v55 = vadd.f32 %v1123_v53, %v1328_v24  ;;  %v548_v56 = vadd.f32 %v1139_v54, %v1328_v24  ;;  %v475_v57 = vpop.f32.mrb[5].mxu0  ;;  %v539_v58 = vpop.f32.mrb[5].mxu1 }
 0x104   : > { %986 = vst [vmem:[%s1343_s17] sm:$0xff] %v985_v51   ;;  %1069 = vst [vmem:[%s1343_s17 + $0x40] sm:$0xff] %v1025_v52   ;;  %v476_v59 = vadd.f32 %v1328_v24, %v475_v57  ;;  %v540_v60 = vadd.f32 %v1328_v24, %v539_v58  ;;  %v1124_v61 = vpop.f32.mrb[6].mxu0  ;;  %v1140_v62 = vpop.f32.mrb[6].mxu1 }
 0x105   : > { %v487_v63 = vadd.f32 %v1124_v61, %v1328_v24  ;;  %v551_v0 = vadd.f32 %v1140_v62, %v1328_v24  ;;  %v478_v1 = vpop.f32.mrb[7].mxu0  ;;  %v542_v2 = vpop.f32.mrb[7].mxu1  ;;  %v592_v5 = vmax.f32 %v484_v55, 0.0  ;;  %v608_v6 = vmax.f32 %v548_v56, 0.0 }
 0x106   : > { %v479_v3 = vadd.f32 %v1328_v24, %v478_v1  ;;  %v543_v4 = vadd.f32 %v1328_v24, %v542_v2  ;;  %v590_v9 = vmax.f32 %v476_v59, 0.0  ;;  %v606_v10 = vmax.f32 %v540_v60, 0.0 }
 0x107   : > { %v593_v7 = vmax.f32 %v487_v63, 0.0  ;;  %v609_v8 = vmax.f32 %v551_v0, 0.0 }
 0x108   : > { %v591_v11 = vmax.f32 %v479_v3, 0.0  ;;  %v607_v12 = vmax.f32 %v543_v4, 0.0 }
 0x109   : > { %v1000_v13 = vpack.c.bf16 %v593_v7, %v592_v5  ;;  %v1040_v14 = vpack.c.bf16 %v609_v8, %v608_v6 }
 0x10a   : > { %v995_v15 = vpack.c.bf16 %v591_v11, %v590_v9  ;;  %v1035_v16 = vpack.c.bf16 %v607_v12, %v606_v10  ;;  %v1127_v17 = vpop.f32.mrb[8].mxu0  ;;  %v1143_v18 = vpop.f32.mrb[8].mxu1 }
 0x10b   : > { %1064 = vst [vmem:[%s1343_s17 + $0x18] sm:$0xff] %v1000_v13   ;;  %1072 = vst [vmem:[%s1343_s17 + $0x58] sm:$0xff] %v1040_v14   ;;  %v500_v19 = vadd.f32 %v1127_v17, %v1328_v24  ;;  %v564_v20 = vadd.f32 %v1143_v18, %v1328_v24  ;;  %v491_v21 = vpop.f32.mrb[9].mxu0  ;;  %v555_v22 = vpop.f32.mrb[9].mxu1 }
 0x10c   : > { %1063 = vst [vmem:[%s1343_s17 + $0x10] sm:$0xff] %v995_v15   ;;  %1071 = vst [vmem:[%s1343_s17 + $0x50] sm:$0xff] %v1035_v16   ;;  %v492_v23 = vadd.f32 %v1328_v24, %v491_v21  ;;  %v556_v25 = vadd.f32 %v1328_v24, %v555_v22  ;;  %v1128_v26 = vpop.f32.mrb[10].mxu0  ;;  %v1144_v27 = vpop.f32.mrb[10].mxu1 }
 0x10d   : > { %v503_v28 = vadd.f32 %v1128_v26, %v1328_v24  ;;  %v567_v29 = vadd.f32 %v1144_v27, %v1328_v24  ;;  %v494_v30 = vpop.f32.mrb[11].mxu0  ;;  %v558_v31 = vpop.f32.mrb[11].mxu1  ;;  %v596_v34 = vmax.f32 %v500_v19, 0.0  ;;  %v612_v35 = vmax.f32 %v564_v20, 0.0 }
 0x10e   : > { %v495_v32 = vadd.f32 %v1328_v24, %v494_v30  ;;  %v559_v33 = vadd.f32 %v1328_v24, %v558_v31  ;;  %v594_v38 = vmax.f32 %v492_v23, 0.0  ;;  %v610_v39 = vmax.f32 %v556_v25, 0.0 }
 0x10f   : > { %v597_v36 = vmax.f32 %v503_v28, 0.0  ;;  %v613_v37 = vmax.f32 %v567_v29, 0.0 }
 0x110   : > { %v595_v40 = vmax.f32 %v495_v32, 0.0  ;;  %v611_v41 = vmax.f32 %v559_v33, 0.0 }
 0x111   : > { %v1010_v42 = vpack.c.bf16 %v597_v36, %v596_v34  ;;  %v1050_v43 = vpack.c.bf16 %v613_v37, %v612_v35 }
 0x112   : > { %v1005_v44 = vpack.c.bf16 %v595_v40, %v594_v38  ;;  %v1045_v45 = vpack.c.bf16 %v611_v41, %v610_v39  ;;  %v1131_v46 = vpop.f32.mrb[12].mxu0  ;;  %v1147_v47 = vpop.f32.mrb[12].mxu1 }
 0x113   : > { %1066 = vst [vmem:[%s1343_s17 + $0x28] sm:$0xff] %v1010_v42   ;;  %1074 = vst [vmem:[%s1343_s17 + $0x68] sm:$0xff] %v1050_v43   ;;  %v516_v48 = vadd.f32 %v1131_v46, %v1328_v24  ;;  %v580_v49 = vadd.f32 %v1147_v47, %v1328_v24  ;;  %v507_v50 = vpop.f32.mrb[13].mxu0  ;;  %v571_v51 = vpop.f32.mrb[13].mxu1 }
 0x114   : > { %1065 = vst [vmem:[%s1343_s17 + $0x20] sm:$0xff] %v1005_v44   ;;  %1073 = vst [vmem:[%s1343_s17 + $0x60] sm:$0xff] %v1045_v45   ;;  %v508_v52 = vadd.f32 %v1328_v24, %v507_v50  ;;  %v572_v53 = vadd.f32 %v1328_v24, %v571_v51  ;;  %v1132_v54 = vpop.f32.mrb[14].mxu0  ;;  %v1148_v55 = vpop.f32.mrb[14].mxu1 }
 0x115   : > { %v519_v56 = vadd.f32 %v1132_v54, %v1328_v24  ;;  %v583_v57 = vadd.f32 %v1148_v55, %v1328_v24  ;;  %v510_v58 = vpop.f32.mrb[15].mxu0  ;;  %v574_v59 = vpop.f32.mrb[15].mxu1  ;;  %v600_v62 = vmax.f32 %v516_v48, 0.0  ;;  %v616_v63 = vmax.f32 %v580_v49, 0.0 }
 0x116   : > { %v511_v60 = vadd.f32 %v1328_v24, %v510_v58  ;;  %v575_v61 = vadd.f32 %v1328_v24, %v574_v59  ;;  %v598_v2 = vmax.f32 %v508_v52, 0.0  ;;  %v614_v3 = vmax.f32 %v572_v53, 0.0 }
 0x117   : > { %v601_v0 = vmax.f32 %v519_v56, 0.0  ;;  %v617_v1 = vmax.f32 %v583_v57, 0.0 }
 0x118   : > { %v599_v4 = vmax.f32 %v511_v60, 0.0  ;;  %v615_v5 = vmax.f32 %v575_v61, 0.0 }
 0x119   : > { %v1020_v6 = vpack.c.bf16 %v601_v0, %v600_v62  ;;  %v1060_v7 = vpack.c.bf16 %v617_v1, %v616_v63 }
 0x11a   : > { %v1015_v8 = vpack.c.bf16 %v599_v4, %v598_v2  ;;  %v1055_v9 = vpack.c.bf16 %v615_v5, %v614_v3 }
 0x11b   : > { %1068 = vst [vmem:[%s1343_s17 + $0x38] sm:$0xff] %v1020_v6   ;;  %1076 = vst [vmem:[%s1343_s17 + $0x78] sm:$0xff] %v1060_v7  }
 0x11c   : > { %1067 = vst [vmem:[%s1343_s17 + $0x30] sm:$0xff] %v1015_v8   ;;  %1075 = vst [vmem:[%s1343_s17 + $0x70] sm:$0xff] %v1055_v9  }
 0x11d PF: > { %s13_s14 = sadd.s32 1, %s1235_s14   ;;  %s1398_s12 = smov %s1231_s13 }
 0x11e   : > { %p10_p5 = scmp.ge.s32.totalorder %s13_s14, 4   ;;  %s1399_s13 = smov %s1401_s15 }
 0x120   :  { %12 = sbr.rel (!%p10_p5) target bundleno = 2 (0x2), region = 68 }

// kernel: bottleneck_forward.4
= control target key start
LH: loop header
LB: loop body
LE: loop exit
PB: predicated region body
PF: predicated region fallthrough
CT: control target
= control target key end

     0   :  { %s3184_s12 = smov 0   ;;  %s3186_s13 = smov 0   ;;  %s3569_s0 = inlined_call_operand.vmem [shape: bf16[8,9,9,128], index: 0, kind: input, shape index: {}]   ;;  %s3570_s1 = inlined_call_operand.vmem [shape: bf16[3,3,128,128], index: 1, kind: input, shape index: {}]   ;;  %s3571_s2 = inlined_call_operand.vmem [shape: f32[1,128], index: 2, kind: input, shape index: {}]   ;;  %s3572_s3 = inlined_call_operand.vmem [shape: bf16[2,64,128], index: 3, kind: output, shape index: {}]  }
   0x1   :  { %s3188_s14 = smov 0  }
   0x2 LB: > { %s25_s15 = sadd.s32 1, %s3158_s13  ;;  %p2259_p0 = scmp.ge.s32.totalorder %s3162_s14, 1  ;;  %s3162_s14 = sphi %s3188_s14, %s13_s14   ;;  %s3158_s13 = sphi %s3186_s13, %s3576_s13   ;;  %s3154_s12 = sphi %s3184_s12, %s3575_s12  }
   0x3   : > { %p27_p1 = scmp.ge.s32.totalorder %s25_s15, 2  ;;  %p170_p2 = scmp.lt.s32.totalorder %s3162_s14, 3 }
   0x5   : > { %s3578_s15 = smov (%p27_p1, %s25_s15), 0  ;;  %p171_p3 = pnand %p2259_p0, %p170_p2 }
   0x6   : > { %v3044_v0 = vld [vmem:[%s3570_s1 + $0x40] sm:$0xff] (!%p171_p3)   ;;  %s2260_s18 = sshll.u32 (!%p171_p3), %s3154_s12, 2  ;;  %v3046_v2 = vld [vmem:[%s3570_s1 + $0x48] sm:$0xff] (!%p171_p3)   ;;  %v3048_v4 = vld [vmem:[%s3570_s1 + $0x50] sm:$0xff] (!%p171_p3)   ;;  %vm568_vm0 = vsmask.f32 (!%p171_p3), 3328 }
   0x7   : > { %174 = sbr.rel (%p171_p3) target bundleno = 392 (0x188), region = 32  ;;  %v3045_v1 = vld [vmem:[%s3570_s1 + $0x100] sm:$0xff] (!%p171_p3)   ;;  %p206_p4 = scmp.lt.s32.totalorder (!%p171_p3), %s2260_s18, 7  ;;  %2723 = vmatprep.subr.bf16.mxu1 (!%p171_p3), %v3044_v0  ;;  %v3047_v3 = vld [vmem:[%s3570_s1 + $0x108] sm:$0xff] (!%p171_p3)   ;;  %v3049_v5 = vld [vmem:[%s3570_s1 + $0x110] sm:$0xff] (!%p171_p3)  }
   0x8   : > { %2819 = vmatprep.subr.bf16.mxu0 (!%p171_p3), %v3045_v1  ;;  %2724 = vmatpush3.bf16.msra.mxu1 (!%p171_p3), %v3044_v0  ;;  %v3050_v6 = vld [vmem:[%s3570_s1 + $0x58] sm:$0xff] (!%p171_p3)   ;;  %v3052_v8 = vld [vmem:[%s3570_s1 + $0x60] sm:$0xff] (!%p171_p3)   ;;  %v3054_v10 = vld [vmem:[%s3570_s1 + $0x68] sm:$0xff] (!%p171_p3)   ;;  %vm569_vm1 = vsmask.f32 (!%p171_p3), 7440  ;;  %p219_p5 = scmp.lt.s32.totalorder (!%p171_p3), %s3154_s12, 1 }
   0x9   : > { %2820 = vmatpush3.bf16.msra.mxu0 (!%p171_p3), %v3045_v1  ;;  %2725 = vmatprep.subr.bf16.mxu1 (!%p171_p3), %v3046_v2  ;;  %v3051_v7 = vld [vmem:[%s3570_s1 + $0x118] sm:$0xff] (!%p171_p3)   ;;  %v3053_v9 = vld [vmem:[%s3570_s1 + $0x120] sm:$0xff] (!%p171_p3)   ;;  %v3055_v12 = vld [vmem:[%s3570_s1 + $0x128] sm:$0xff] (!%p171_p3)  }
   0xa   : > { %2821 = vmatprep.subr.bf16.mxu0 (!%p171_p3), %v3047_v3  ;;  %v3056_v14 = vld [vmem:[%s3570_s1 + $0x70] sm:$0xff] (!%p171_p3)   ;;  %v3058_v16 = vld [vmem:[%s3570_s1 + $0x78] sm:$0xff] (!%p171_p3)   ;;  %v3061_v18 = vld [vmem:[%s3570_s1] sm:$0xff] (!%p171_p3)  }
   0xb   : > { %v3057_v15 = vld [vmem:[%s3570_s1 + $0x130] sm:$0xff] (!%p171_p3)   ;;  %v3059_v17 = vld [vmem:[%s3570_s1 + $0x138] sm:$0xff] (!%p171_p3)   ;;  %v3063_v19 = vld [vmem:[%s3570_s1 + $0x140] sm:$0xff] (!%p171_p3)  }
   0xc   : > { %2726 = vmatpush3.bf16.msra.mxu1 (!%p171_p3), %v3046_v2  ;;  %v3066_v22 = vld [vmem:[%s3570_s1 + $0x8] sm:$0xff] (!%p171_p3)   ;;  %v3068_v26 = vld [vmem:[%s3570_s1 + $0x10] sm:$0xff] (!%p171_p3)   ;;  %v3070_v28 = vld [vmem:[%s3570_s1 + $0x18] sm:$0xff] (!%p171_p3)  }
   0xd   : > { %2822 = vmatpush3.bf16.msra.mxu0 (!%p171_p3), %v3047_v3  ;;  %2727 = vmatprep.subr.bf16.mxu1 (!%p171_p3), %v3048_v4  ;;  %v3067_v23 = vld [vmem:[%s3570_s1 + $0x148] sm:$0xff] (!%p171_p3)   ;;  %v3069_v27 = vld [vmem:[%s3570_s1 + $0x150] sm:$0xff] (!%p171_p3)   ;;  %v3071_v31 = vld [vmem:[%s3570_s1 + $0x158] sm:$0xff] (!%p171_p3)  }
   0xe   : > { %s3580_s18 = smov (!%p206_p4, %s2260_s18), 7  ;;  %2823 = vmatprep.subr.bf16.mxu0 %v3049_v5  ;;  %v3072_v38 = vld [vmem:[%s3570_s1 + $0x20] sm:$0xff]   ;;  %v3074_v47 = vld [vmem:[%s3570_s1 + $0x28] sm:$0xff]   ;;  %vm3309_vm2 = vmor %vm568_vm0, %vm569_vm1  ;;  %s3582_s12 = smov (!%p219_p5, %s3154_s12), 1 }
   0xf   : > { %s3019_s6 = smul.u32 72, %s3580_s18  ;;  %v3073_v43 = vld [vmem:[%s3570_s1 + $0x160] sm:$0xff]   ;;  %v3075_v50 = vld [vmem:[%s3570_s1 + $0x168] sm:$0xff]   ;;  %v3077_v2 = vld [vmem:[%s3570_s1 + $0x30] sm:$0xff]  }
  0x10   : > { %2728 = vmatpush3.bf16.msra.mxu1 %v3048_v4 }
  0x11   : > { %2824 = vmatpush3.bf16.msra.mxu0 %v3049_v5  ;;  %2729 = vmatprep.subr.bf16.mxu1 %v3050_v6  ;;  %s3238_s17 = scalar_lea.vmem %s3569_s0, %s3019_s6  ;;  %s2583_s6 = sshll.u32 %s3582_s12, 5 }
  0x12   : > { %2825 = vmatprep.subr.bf16.mxu0 %v3051_v7  ;;  %v3060_v11 = vld [vmem:[%s3238_s17 + $0x48] ss:$8 sps:$4 sm:$0xff]   ;;  %v3062_v13 = vld [vmem:[%s3238_s17 + $0xd8] ss:$8 sps:$4 sm:$0xff]   ;;  %v2413_v34 = vld [vmem:[%s3238_s17 + $0x94] sm:$0x1]  ;;  %s226_s9 = scalar_lea.vmem %s3572_s3, %s2583_s6 }
  0x13   : > { %2739 = vmatprep.mubr.bf16.mxu1 %v3060_v11  ;;  %2835 = vmatprep.mubr.bf16.mxu0 %v3062_v13  ;;  %v3064_v20 = vld [vmem:[%s3238_s17 + $0x58] ss:$8 sps:$4 sm:$0xff]   ;;  %v3065_v21 = vld [vmem:[%s3238_s17 + $0xe8] ss:$8 sps:$4 sm:$0xff]   ;;  %v2415_v39 = vld [vmem:[%s3238_s17 + $0x9c] sm:$0x1] }
  0x14   : > { %2730 = vmatpush3.bf16.msra.mxu1 %v3050_v6  ;;  %v3076_v24 = vld [vmem:[%s3238_s17 + $0x68] ss:$8 sps:$4 sm:$0xff]   ;;  %v3078_v25 = vld [vmem:[%s3238_s17 + $0xf8] ss:$8 sps:$4 sm:$0xff]   ;;  %v1205_v40 = vshll.u32 %v2413_v34, 16  ;;  %v1219_v46 = vshll.u32 %v2415_v39, 16 }
  0x15   : > { %2826 = vmatpush3.bf16.msra.mxu0 %v3051_v7  ;;  %2731 = vmatprep.subr.bf16.mxu1 %v3052_v8  ;;  %v3080_v29 = vld [vmem:[%s3238_s17 + $0x78] ss:$8 sps:$4 sm:$0xff]   ;;  %v3081_v30 = vld [vmem:[%s3238_s17 + $0x108] ss:$8 sps:$4 sm:$0xff]   ;;  %v2417_v57 = vld [vmem:[%s3238_s17 + $0xa4] sm:$0x1] }
  0x16   : > { %2827 = vmatprep.subr.bf16.mxu0 %v3053_v9  ;;  %v3084_v32 = vld [vmem:[%s3238_s17] ss:$8 sps:$4 sm:$0xff]   ;;  %v2412_v33 = vld [vmem:[%s3238_s17 + $0x90] sm:$0xf]  ;;  %v2414_v35 = vld [vmem:[%s3238_s17 + $0x98] sm:$0xf] }
  0x17   : > { %v1196_v36 = vshrl.u32 %v2412_v33, 16  ;;  %v1199_v37 = vshll.u32 %v2412_v33, 16  ;;  %v1210_v41 = vshrl.u32 %v2414_v35, 16  ;;  %v1213_v42 = vshll.u32 %v2414_v35, 16  ;;  %v2416_v56 = vld [vmem:[%s3238_s17 + $0xa0] sm:$0xf] }
  0x18   : > { %2732 = vmatpush3.bf16.msra.mxu1 %v3052_v8  ;;  %v1207_v52 = vrot.slane %v1205_v40, 5  ;;  %v1221_v55 = vrot.slane %v1219_v46, 5  ;;  %v2418_v59 = vld [vmem:[%s3238_s17 + $0xa8] sm:$0xf]  ;;  %v2419_v60 = vld [vmem:[%s3238_s17 + $0xac] sm:$0x1] }
  0x19   : > { %2828 = vmatpush3.bf16.msra.mxu0 %v3053_v9  ;;  %2733 = vmatprep.subr.bf16.mxu1 %v3054_v10  ;;  %v1198_v44 = vrot.slane %v1196_v36, 4  ;;  %v1201_v45 = vrot.slane %v1199_v37, 5  ;;  %v1212_v48 = vrot.slane %v1210_v41, 4  ;;  %v1215_v49 = vrot.slane %v1213_v42, 5  ;;  %v3079_v6 = vld [vmem:[%s3570_s1 + $0x170] sm:$0xff]  }
  0x1a   : > { %2829 = vmatprep.subr.bf16.mxu0 %v3055_v12  ;;  %v1224_v61 = vshrl.u32 %v2416_v56, 16  ;;  %v1227_v63 = vshll.u32 %v2416_v56, 16  ;;  %v1233_v0 = vshll.u32 %v2417_v57, 16  ;;  %v1238_v1 = vshrl.u32 %v2418_v59, 16  ;;  %v3098_v37 = vld [vmem:[%s3238_s17 + $0x20] ss:$8 sps:$4 sm:$0xff]  }
  0x1b   : > { %v1202_v51 = vor.u32 %v1201_v45, %v1198_v44  ;;  %v1216_v54 = vor.u32 %v1215_v49, %v1212_v48  ;;  %v1241_v5 = vshll.u32 %v2418_v59, 16  ;;  %v3101_v48 = vld [vmem:[%s3238_s17 + $0x30] ss:$8 sps:$4 sm:$0xff]   ;;  %v2424_v49 = vld [vmem:[%s3238_s17 + $0xc0] sm:$0xf] }
  0x1c   : > { %2734 = vmatpush3.bf16.msra.mxu1 %v3054_v10  ;;  %v1226_v4 = vrot.slane %v1224_v61, 4  ;;  %v1229_v8 = vrot.slane %v1227_v63, 5  ;;  %v1240_v9 = vrot.slane %v1238_v1, 4  ;;  %v1247_v10 = vshll.u32 %v2419_v60, 16  ;;  %v3092_v59 = vld [vmem:[%s3570_s1 + $0x98] sm:$0xff]  }
  0x1d   : > { %2830 = vmatpush3.bf16.msra.mxu0 %v3055_v12  ;;  %2735 = vmatprep.subr.bf16.mxu1 %v3056_v14  ;;  %v1203_v58 = vrot.slane %v1202_v51, 4  ;;  %v1217_v62 = vrot.slane %v1216_v54, 4  ;;  %v1235_v12 = vrot.slane %v1233_v0, 5  ;;  %v1243_v13 = vrot.slane %v1241_v5, 5  ;;  %v2426_v51 = vld [vmem:[%s3238_s17 + $0xc8] sm:$0xf] }
  0x1e   : > { %2831 = vmatprep.subr.bf16.mxu0 %v3057_v15  ;;  %v1280_v56 = vshrl.u32 %v2424_v49, 16  ;;  %v1283_v57 = vshll.u32 %v2424_v49, 16  ;;  %v1294_v61 = vshrl.u32 %v2426_v51, 16 }
  0x1f   : > { %v1208_v3 = vsel %vm3309_vm2, %v1203_v58, %v1207_v52  ;;  %v1222_v7 = vsel %vm3309_vm2, %v1217_v62, %v1221_v55  ;;  %v3091_v52 = vld [vmem:[%s3570_s1 + $0x190] sm:$0xff]   ;;  %v2427_v55 = vld [vmem:[%s3238_s17 + $0xcc] sm:$0x1]  ;;  %v1297_v62 = vshll.u32 %v2426_v51, 16 }
  0x20   : > { %2736 = vmatpush3.bf16.msra.mxu1 %v3056_v14  ;;  %v2444_v11 = vcombine.low %v1208_v3, %v1222_v7  ;;  %v3082_v14 = vld [vmem:[%s3570_s1 + $0x38] sm:$0xff]   ;;  %v1303_v63 = vshll.u32 %v2427_v55, 16  ;;  %v1282_v1 = vrot.slane %v1280_v56, 4 }
  0x21   : > { %2832 = vmatpush3.bf16.msra.mxu0 %v3057_v15  ;;  %2737 = vmatprep.subr.bf16.mxu1 %v3058_v16  ;;  %v1230_v15 = vor.u32 %v1229_v8, %v1226_v4  ;;  %v3093_v4 = vld [vmem:[%s3570_s1 + $0x198] sm:$0xff]   ;;  %v1299_v7 = vrot.slane %v1297_v62, 5 }
  0x22   : > { %2833 = vmatprep.subr.bf16.mxu0 %v3059_v17  ;;  %v1305_v8 = vrot.slane %v1303_v63, 5 }
  0x24   : > { %2738 = vmatpush3.bf16.msra.mxu1 %v3058_v16  ;;  %v1244_v16 = vor.u32 %v1243_v13, %v1240_v9  ;;  %v3094_v13 = vld [vmem:[%s3570_s1 + $0xa0] sm:$0xff]  }
  0x25   : > { %2834 = vmatpush3.bf16.msra.mxu0 %v3059_v17  ;;  %2747 = vmatprep.subr.bf16.mxu1 %v3061_v18  ;;  %v1231_v17 = vrot.slane %v1230_v15, 4 }
  0x26   : > { %2843 = vmatprep.subr.bf16.mxu0 %v3063_v19 }
  0x27   : > { %2740 = vmatmul.mubr.bf16.vlgmr.msra.gmra.mrb[0].mxu1 %v3064_v20  ;;  %v1245_v20 = vrot.slane %v1244_v16, 4  ;;  %v554_v16 = vld [vmem:[%s3238_s17 + $0x8] sm:$0xf] }
  0x28   : > { %2748 = vmatpush3.bf16.msra.mxu1 %v3061_v18  ;;  %2836 = vmatmul.mubr.bf16.vlgmr.msra.gmra.mrb[0].mxu0 %v3065_v21  ;;  %v1249_v18 = vrot.slane %v1247_v10, 5  ;;  %v3085_v21 = vld [vmem:[%s3570_s1 + $0x80] sm:$0xff]  }
  0x29   : > { %2844 = vmatpush3.bf16.msra.mxu0 %v3063_v19  ;;  %2749 = vmatprep.subr.bf16.mxu1 %v3066_v22  ;;  %v3083_v19 = vld [vmem:[%s3570_s1 + $0x178] sm:$0xff]  }
  0x2a   : > { %2845 = vmatprep.subr.bf16.mxu0 %v3067_v23  ;;  %2743 = vmatprep.mubr.bf16.mxu1 %v3076_v24  ;;  %v3086_v24 = vld [vmem:[%s3570_s1 + $0x180] sm:$0xff]  }
  0x2b   : > { %2839 = vmatprep.mubr.bf16.mxu0 %v3078_v25  ;;  %v3087_v25 = vld [vmem:[%s3238_s17 + $0x10] ss:$8 sps:$4 sm:$0xff]  }
  0x2c   : > { %2750 = vmatpush3.bf16.msra.mxu1 %v3066_v22  ;;  %v1236_v22 = vsel %vm3309_vm2, %v1231_v17, %v1235_v12  ;;  %v553_v12 = vld [vmem:[%s3238_s17 + $0x4] sm:$0x1]  ;;  %v555_v17 = vld [vmem:[%s3238_s17 + $0xc] sm:$0x1] }
  0x2d   : > { %2846 = vmatpush3.bf16.msra.mxu0 %v3067_v23  ;;  %2751 = vmatprep.subr.bf16.mxu1 %v3068_v26  ;;  %v1250_v23 = vsel %vm3309_vm2, %v1245_v20, %v1249_v18 }
  0x2e   : > { %2847 = vmatprep.subr.bf16.mxu0 %v3069_v27 }
  0x2f   : > { %2744 = vmatmul.mubr.bf16.gmra.mrb[4].mxu1 %v3080_v29  ;;  %v3089_v29 = vld [vmem:[%s3570_s1 + $0x188] sm:$0xff]  }
  0x30   : > { %2752 = vmatpush3.bf16.msra.mxu1 %v3068_v26  ;;  %2840 = vmatmul.mubr.bf16.gmra.mrb[4].mxu0 %v3081_v30  ;;  %v3088_v26 = vld [vmem:[%s3570_s1 + $0x88] sm:$0xff]   ;;  %v2421_v30 = vld [vmem:[%s3238_s17 + $0xb4] sm:$0x1] }
  0x31   : > { %2848 = vmatpush3.bf16.msra.mxu0 %v3069_v27  ;;  %2753 = vmatprep.subr.bf16.mxu1 %v3070_v28  ;;  %v2420_v27 = vld [vmem:[%s3238_s17 + $0xb0] sm:$0xf]  ;;  %v1261_v35 = vshll.u32 %v2421_v30, 16 }
  0x32   : > { %2849 = vmatprep.subr.bf16.mxu0 %v3071_v31  ;;  %2763 = vmatprep.mubr.bf16.mxu1 %v3084_v32  ;;  %v2423_v32 = vld [vmem:[%s3238_s17 + $0xbc] sm:$0x1]  ;;  %v1252_v33 = vshrl.u32 %v2420_v27, 16  ;;  %v1255_v34 = vshll.u32 %v2420_v27, 16  ;;  %v595_v27 = vshll.u32 %v555_v17, 16 }
  0x33   : > { %2859 = vmatprep.mubr.bf16.mxu0 %v2444_v11  ;;  %v1275_v39 = vshll.u32 %v2423_v32, 16  ;;  %v1263_v44 = vrot.slane %v1261_v35, 5  ;;  %v552_v11 = vld [vmem:[%s3238_s17] sm:$0xf]  ;;  %v3096_v32 = vld [vmem:[%s3570_s1 + $0xa8] sm:$0xff]  }
  0x34   : > { %2754 = vmatpush3.bf16.msra.mxu1 %v3070_v28  ;;  %v2445_v28 = vcombine.low %v1236_v22, %v1250_v23  ;;  %v1254_v40 = vrot.slane %v1252_v33, 4  ;;  %v1257_v41 = vrot.slane %v1255_v34, 5  ;;  %v572_v18 = vshrl.u32 %v552_v11, 16  ;;  %v563_v17 = vld [vmem:[%s3238_s17 + $0x2c] sm:$0x1] }
  0x35   : > { %2850 = vmatpush3.bf16.msra.mxu0 %v3071_v31  ;;  %2755 = vmatprep.subr.bf16.mxu1 %v3072_v38  ;;  %v2422_v31 = vld [vmem:[%s3238_s17 + $0xb8] sm:$0xf]  ;;  %v1277_v46 = vrot.slane %v1275_v39, 5  ;;  %v586_v22 = vshrl.u32 %v554_v16, 16  ;;  %v589_v23 = vshll.u32 %v554_v16, 16 }
  0x36   : > { %2851 = vmatprep.subr.bf16.mxu0 %v3073_v43  ;;  %v1266_v36 = vshrl.u32 %v2422_v31, 16  ;;  %v562_v16 = vld [vmem:[%s3238_s17 + $0x28] sm:$0xf] }
  0x37   : > { %v588_v30 = vrot.slane %v586_v22, 4  ;;  %v642_v22 = vshrl.u32 %v562_v16, 16 }
  0x38   : > { %2756 = vmatpush3.bf16.msra.mxu1 %v3072_v38  ;;  %v1269_v38 = vshll.u32 %v2422_v31, 16  ;;  %v1268_v42 = vrot.slane %v1266_v36, 4  ;;  %v591_v31 = vrot.slane %v589_v23, 5  ;;  %v597_v36 = vrot.slane %v595_v27, 5 }
  0x39   : > { %2852 = vmatpush3.bf16.msra.mxu0 %v3073_v43  ;;  %2757 = vmatprep.subr.bf16.mxu1 %v3074_v47  ;;  %v3090_v43 = vld [vmem:[%s3570_s1 + $0x90] sm:$0xff]   ;;  %v645_v23 = vshll.u32 %v562_v16, 16  ;;  %v2529_v16 = vld [vmem:[%s3238_s17 + $0xc] sm:$0x1] }
  0x3a   : > { %2853 = vmatprep.subr.bf16.mxu0 %v3075_v50  ;;  %v1271_v45 = vrot.slane %v1269_v38, 5  ;;  %v3097_v38 = vld [vmem:[%s3570_s1 + $0x1a8] sm:$0xff]  }
  0x3c   : > { %2758 = vmatpush3.bf16.msra.mxu1 %v3074_v47  ;;  %v1258_v47 = vor.u32 %v1257_v41, %v1254_v40  ;;  %v1272_v54 = vor.u32 %v1271_v45, %v1268_v42  ;;  %v592_v40 = vor.u32 %v591_v31, %v588_v30  ;;  %v556_v41 = vld [vmem:[%s3238_s17 + $0x10] sm:$0xf]  ;;  %v647_v31 = vrot.slane %v645_v23, 5 }
  0x3d   : > { %2854 = vmatpush3.bf16.msra.mxu0 %v3075_v50  ;;  %2759 = vmatprep.subr.bf16.mxu1 %v3077_v2  ;;  %v2425_v50 = vld [vmem:[%s3238_s17 + $0xc4] sm:$0x1]  ;;  %v600_v45 = vshrl.u32 %v556_v41, 16  ;;  %v564_v30 = vld [vmem:[%s3238_s17 + $0x30] sm:$0xf] }
  0x3e   : > { %2855 = vmatprep.subr.bf16.mxu0 %v3079_v6  ;;  %v1289_v58 = vshll.u32 %v2425_v50, 16  ;;  %v1259_v60 = vrot.slane %v1258_v47, 4  ;;  %v1273_v0 = vrot.slane %v1272_v54, 4  ;;  %v559_v47 = vld [vmem:[%s3238_s17 + $0x1c] sm:$0x1] }
  0x40   : > { %2760 = vmatpush3.bf16.msra.mxu1 %v3077_v2  ;;  %v1285_v2 = vrot.slane %v1283_v57, 5  ;;  %v1291_v3 = vrot.slane %v1289_v58, 5  ;;  %v1264_v5 = vsel %vm3309_vm2, %v1259_v60, %v1263_v44  ;;  %v1278_v9 = vsel %vm3309_vm2, %v1273_v0, %v1277_v46  ;;  %v558_v44 = vld [vmem:[%s3238_s17 + $0x18] sm:$0xf]  ;;  %v3100_v60 = vld [vmem:[%s3570_s1 + $0x1b0] sm:$0xff]  }
  0x41   : > { %2856 = vmatpush3.bf16.msra.mxu0 %v3079_v6  ;;  %2761 = vmatprep.subr.bf16.mxu1 %v3082_v14  ;;  %v1296_v6 = vrot.slane %v1294_v61, 4  ;;  %v593_v46 = vrot.slane %v592_v40, 4  ;;  %v614_v50 = vshrl.u32 %v558_v44, 16  ;;  %v617_v54 = vshll.u32 %v558_v44, 16 }
  0x42   : > { %2857 = vmatprep.subr.bf16.mxu0 %v3083_v19  ;;  %v1286_v10 = vor.u32 %v1285_v2, %v1282_v1  ;;  %v623_v58 = vshll.u32 %v559_v47, 16 }
  0x43   : > { %v1300_v15 = vor.u32 %v1299_v7, %v1296_v6  ;;  %v598_v55 = vsel %vm3309_vm2, %v593_v46, %v597_v36  ;;  %v616_v57 = vrot.slane %v614_v50, 4  ;;  %v619_v63 = vrot.slane %v617_v54, 5  ;;  %v3103_v6 = vld [vmem:[%s3570_s1 + $0x1b8] sm:$0xff]   ;;  %v3104_v7 = vld [vmem:[%s3570_s1 + $0xc0] sm:$0xff]  }
  0x44   : > { %2762 = vmatpush3.bf16.msra.mxu1 %v3082_v14  ;;  %v2446_v14 = vcombine.low %v1264_v5, %v1278_v9  ;;  %v1287_v20 = vrot.slane %v1286_v10, 4  ;;  %v3106_v10 = vld [vmem:[%s3570_s1 + $0x1c0] sm:$0xff]   ;;  %v3112_v50 = vld [vmem:[%s3570_s1 + $0xd8] sm:$0xff]  }
  0x45   : > { %2858 = vmatpush3.bf16.msra.mxu0 %v3083_v19  ;;  %2771 = vmatprep.subr.bf16.mxu1 %v3085_v21  ;;  %v575_v19 = vshll.u32 %v552_v11, 16  ;;  %v620_v1 = vor.u32 %v619_v63, %v616_v57  ;;  %v3107_v11 = vld [vmem:[%s3238_s17 + $0x18] ss:$8 sps:$4 sm:$0xff]  }
  0x46   : > { %2867 = vmatprep.subr.bf16.mxu0 %v3086_v24 }
  0x47   : > { %2764 = vmatmul.mubr.bf16.vlgmr.msra.gmra.mrb[0].mxu1 %v3087_v25  ;;  %v574_v25 = vrot.slane %v572_v18, 4  ;;  %v621_v5 = vrot.slane %v620_v1, 4  ;;  %v3109_v18 = vld [vmem:[%s3570_s1 + $0x1c8] sm:$0xff]   ;;  %v3114_v1 = vld [vmem:[%s3570_s1 + $0xe0] sm:$0xff]  }
  0x48   : > { %2772 = vmatpush3.bf16.msra.mxu1 %v3085_v21  ;;  %2860 = vmatmul.mubr.bf16.vlgmr.msra.gmra.mrb[0].mxu0 %v2445_v28  ;;  %v581_v21 = vshll.u32 %v553_v12, 16  ;;  %v3095_v28 = vld [vmem:[%s3570_s1 + $0x1a0] sm:$0xff]  }
  0x49   : > { %2868 = vmatpush3.bf16.msra.mxu0 %v3086_v24  ;;  %2773 = vmatprep.subr.bf16.mxu1 %v3088_v26  ;;  %v1301_v24 = vrot.slane %v1300_v15, 4  ;;  %v560_v12 = vld [vmem:[%s3238_s17 + $0x20] sm:$0xf]  ;;  %v561_v15 = vld [vmem:[%s3238_s17 + $0x24] sm:$0x1] }
  0x4a   : > { %2869 = vmatprep.subr.bf16.mxu0 %v3089_v29  ;;  %2767 = vmatprep.mubr.bf16.mxu1 %v3098_v37  ;;  %v583_v35 = vrot.slane %v581_v21, 5  ;;  %v3105_v37 = vld [vmem:[%s3238_s17 + $0x8] ss:$8 sps:$4 sm:$0xff]   ;;  %v637_v21 = vshll.u32 %v561_v15, 16 }
  0x4b   : > { %2863 = vmatprep.mubr.bf16.mxu0 %v2446_v14  ;;  %v1306_v33 = vsel %vm3309_vm2, %v1301_v24, %v1305_v8  ;;  %v3108_v14 = vld [vmem:[%s3570_s1 + $0xc8] sm:$0xff]   ;;  %v651_v24 = vshll.u32 %v563_v17, 16  ;;  %v2530_v17 = vld [vmem:[%s3238_s17 + $0x10] sm:$0xf] }
  0x4c   : > { %2774 = vmatpush3.bf16.msra.mxu1 %v3088_v26  ;;  %v577_v26 = vrot.slane %v575_v19, 5  ;;  %v628_v19 = vshrl.u32 %v560_v12, 16  ;;  %v2528_v15 = vld [vmem:[%s3238_s17 + $0x8] sm:$0xf]  ;;  %v1837_v23 = vshll.u32 %v2530_v17, 16 }
  0x4d   : > { %2870 = vmatpush3.bf16.msra.mxu0 %v3089_v29  ;;  %2775 = vmatprep.subr.bf16.mxu1 %v3090_v43  ;;  %v1292_v29 = vsel %vm3309_vm2, %v1287_v20, %v1291_v3  ;;  %v625_v3 = vrot.slane %v623_v58, 5  ;;  %v631_v20 = vshll.u32 %v560_v12, 16  ;;  %v3120_v58 = vld [vmem:[%s3238_s17 + $0x38] ss:$8 sps:$4 sm:$0xff]  }
  0x4e   : > { %2871 = vmatprep.subr.bf16.mxu0 %v3091_v52  ;;  %v578_v34 = vor.u32 %v577_v26, %v574_v25  ;;  %v2447_v39 = vcombine.low %v1292_v29, %v1306_v33  ;;  %v3118_v25 = vld [vmem:[%s3238_s17 + $0x28] ss:$8 sps:$4 sm:$0xff]   ;;  %v630_v26 = vrot.slane %v628_v19, 4  ;;  %v644_v29 = vrot.slane %v642_v22, 4  ;;  %v565_v33 = vld [vmem:[%s3238_s17 + $0x34] sm:$0x1] }
  0x4f   : > { %2768 = vmatmul.mubr.bf16.gmra.mrb[4].mxu1 %v3101_v48  ;;  %v603_v48 = vshll.u32 %v556_v41, 16  ;;  %v626_v9 = vsel %vm3309_vm2, %v621_v5, %v625_v3  ;;  %v633_v27 = vrot.slane %v631_v20, 5  ;;  %v665_v40 = vshll.u32 %v565_v33, 16  ;;  %v3111_v41 = vld [vmem:[%s3570_s1 + $0x1d0] sm:$0xff]   ;;  %v3115_v5 = vld [vmem:[%s3570_s1 + $0x1e0] sm:$0xff]   ;;  %v3122_v12 = vld [vmem:[%s3570_s1 + $0xf8] sm:$0xff]  }
  0x50   : > { %2776 = vmatpush3.bf16.msra.mxu1 %v3090_v43  ;;  %v579_v42 = vrot.slane %v578_v34, 4  ;;  %v557_v43 = vld [vmem:[%s3238_s17 + $0x14] sm:$0x1]  ;;  %2864 = vmatmul.mubr.bf16.gmra.mrb[4].mxu0 %v2447_v39  ;;  %v566_v34 = vld [vmem:[%s3238_s17 + $0x38] sm:$0xf]  ;;  %v659_v39 = vshll.u32 %v564_v30, 16 }
  0x51   : > { %2872 = vmatpush3.bf16.msra.mxu0 %v3091_v52  ;;  %2777 = vmatprep.subr.bf16.mxu1 %v3092_v59  ;;  %v609_v49 = vshll.u32 %v557_v43, 16  ;;  %v602_v52 = vrot.slane %v600_v45, 4  ;;  %v605_v56 = vrot.slane %v603_v48, 5  ;;  %v634_v36 = vor.u32 %v633_v27, %v630_v26  ;;  %v2539_v33 = vld [vmem:[%s3238_s17 + $0x34] sm:$0x1] }
  0x52   : > { %2873 = vmatprep.subr.bf16.mxu0 %v3093_v4  ;;  %v584_v51 = vsel %vm3309_vm2, %v579_v42, %v583_v35  ;;  %2883 = vmatprep.mubr.bf16.mxu0 %v3105_v37  ;;  %v3110_v35 = vld [vmem:[%s3570_s1 + $0xd0] sm:$0xff]   ;;  %v567_v37 = vld [vmem:[%s3238_s17 + $0x3c] sm:$0x1]  ;;  %v648_v42 = vor.u32 %v647_v31, %v644_v29  ;;  %v670_v43 = vshrl.u32 %v566_v34, 16  ;;  %v673_v44 = vshll.u32 %v566_v34, 16 }
  0x53   : > { %v2328_v61 = vcombine.low %v584_v51, %v598_v55  ;;  %v611_v62 = vrot.slane %v609_v49, 5  ;;  %v606_v0 = vor.u32 %v605_v56, %v602_v52  ;;  %v679_v45 = vshll.u32 %v567_v37, 16  ;;  %v2538_v29 = vld [vmem:[%s3238_s17 + $0x30] sm:$0xf]  ;;  %v3127_v34 = vld [vmem:[%s3238_s17 + $0x60] ss:$8 sps:$4 sm:$0xff]  }
  0x54   : > { %2778 = vmatpush3.bf16.msra.mxu1 %v3092_v59  ;;  %v3099_v59 = vld [vmem:[%s3570_s1 + $0xb0] sm:$0xff]   ;;  %v635_v46 = vrot.slane %v634_v36, 4  ;;  %v661_v48 = vrot.slane %v659_v39, 5  ;;  %v667_v49 = vrot.slane %v665_v40, 5  ;;  %v649_v51 = vrot.slane %v648_v42, 4  ;;  %v3129_v39 = vld [vmem:[%s3570_s1 + $0x208] sm:$0xff]  }
  0x55   : > { %2874 = vmatpush3.bf16.msra.mxu0 %v3093_v4  ;;  %2779 = vmatprep.subr.bf16.mxu1 %v3094_v13  ;;  %v607_v2 = vrot.slane %v606_v0, 4  ;;  %v3102_v4 = vld [vmem:[%s3570_s1 + $0xb8] sm:$0xff]   ;;  %v672_v52 = vrot.slane %v670_v43, 4  ;;  %v675_v54 = vrot.slane %v673_v44, 5  ;;  %v681_v55 = vrot.slane %v679_v45, 5 }
  0x56   : > { %2875 = vmatprep.subr.bf16.mxu0 %v3095_v28  ;;  %2787 = vmatprep.mubr.bf16.mxu1 %v2328_v61  ;;  %v3113_v61 = vld [vmem:[%s3570_s1 + $0x1d8] sm:$0xff]   ;;  %v1820_v19 = vshrl.u32 %v2528_v15, 16  ;;  %v1823_v20 = vshll.u32 %v2528_v15, 16  ;;  %v1834_v22 = vshrl.u32 %v2530_v17, 16  ;;  %v1893_v42 = vshll.u32 %v2538_v29, 16  ;;  %v3136_v15 = vld [vmem:[%s3570_s1 + $0x220] sm:$0xff]  }
  0x57   : > { %v612_v8 = vsel %vm3309_vm2, %v607_v2, %v611_v62  ;;  %v1899_v43 = vshll.u32 %v2539_v33, 16  ;;  %v3130_v44 = vld [vmem:[%s3238_s17 + $0xb0] ss:$8 sps:$4 sm:$0xff]  }
  0x58   : > { %2780 = vmatpush3.bf16.msra.mxu1 %v3094_v13  ;;  %v2329_v13 = vcombine.low %v612_v8, %v626_v9  ;;  %v3116_v8 = vld [vmem:[%s3570_s1 + $0xe8] sm:$0xff]   ;;  %v1822_v26 = vrot.slane %v1820_v19, 4  ;;  %v1825_v27 = vrot.slane %v1823_v20, 5  ;;  %v1836_v31 = vrot.slane %v1834_v22, 4 }
  0x59   : > { %2876 = vmatpush3.bf16.msra.mxu0 %v3095_v28  ;;  %2781 = vmatprep.subr.bf16.mxu1 %v3096_v32  ;;  %v639_v28 = vrot.slane %v637_v21, 5  ;;  %v3117_v9 = vld [vmem:[%s3570_s1 + $0x1e8] sm:$0xff]   ;;  %v1829_v21 = vshll.u32 %v2529_v16, 16 }
  0x5a   : > { %2877 = vmatprep.subr.bf16.mxu0 %v3097_v38  ;;  %v3137_v20 = vld [vmem:[%s3570_s1 + $0x228] sm:$0xff]  }
  0x5b   : > { %v640_v56 = vsel %vm3309_vm2, %v635_v46, %v639_v28  ;;  %v2537_v28 = vld [vmem:[%s3238_s17 + $0x2c] sm:$0x1]  ;;  %v1831_v45 = vrot.slane %v1829_v21, 5  ;;  %v2541_v21 = vld [vmem:[%s3238_s17 + $0x3c] sm:$0x1] }
  0x5c   : > { %2782 = vmatpush3.bf16.msra.mxu1 %v3096_v32  ;;  %v653_v32 = vrot.slane %v651_v24, 5 }
  0x5d   : > { %2878 = vmatpush3.bf16.msra.mxu0 %v3097_v38  ;;  %2783 = vmatprep.subr.bf16.mxu1 %v3099_v59  ;;  %v656_v38 = vshrl.u32 %v564_v30, 16  ;;  %v3126_v30 = vld [vmem:[%s3238_s17 + $0xa0] ss:$8 sps:$4 sm:$0xff]  }
  0x5e   : > { %2879 = vmatprep.subr.bf16.mxu0 %v3100_v60 }
  0x5f   : > { %v658_v47 = vrot.slane %v656_v38, 4  ;;  %v1885_v38 = vshll.u32 %v2537_v28, 16 }
  0x60   : > { %2784 = vmatpush3.bf16.msra.mxu1 %v3099_v59  ;;  %v654_v59 = vsel %vm3309_vm2, %v649_v51, %v653_v32  ;;  %v1839_v32 = vrot.slane %v1837_v23, 5 }
  0x61   : > { %2880 = vmatpush3.bf16.msra.mxu0 %v3100_v60  ;;  %2785 = vmatprep.subr.bf16.mxu1 %v3102_v4  ;;  %v662_v57 = vor.u32 %v661_v48, %v658_v47  ;;  %v676_v60 = vor.u32 %v675_v54, %v672_v52  ;;  %v2330_v62 = vcombine.low %v640_v56, %v654_v59  ;;  %v1895_v54 = vrot.slane %v1893_v42, 5 }
  0x62   : > { %2881 = vmatprep.subr.bf16.mxu0 %v3103_v6  ;;  %v1840_v40 = vor.u32 %v1839_v32, %v1836_v31  ;;  %v1887_v56 = vrot.slane %v1885_v38, 5  ;;  %v1901_v59 = vrot.slane %v1899_v43, 5  ;;  %v2533_v31 = vld [vmem:[%s3238_s17 + $0x1c] sm:$0x1]  ;;  %v2535_v32 = vld [vmem:[%s3238_s17 + $0x24] sm:$0x1] }
  0x63   : > { %v663_v63 = vrot.slane %v662_v57, 4  ;;  %v677_v0 = vrot.slane %v676_v60, 4  ;;  %v3134_v57 = vld [vmem:[%s3570_s1 + $0x210] sm:$0xff]  }
  0x64   : > { %2786 = vmatpush3.bf16.msra.mxu1 %v3102_v4  ;;  %v3125_v4 = vld [vmem:[%s3238_s17 + $0x50] ss:$8 sps:$4 sm:$0xff]   ;;  %v1841_v51 = vrot.slane %v1840_v40, 4 }
  0x65   : > { %2882 = vmatpush3.bf16.msra.mxu0 %v3103_v6  ;;  %2795 = vmatprep.subr.bf16.mxu1 %v3104_v7  ;;  %v668_v2 = vsel %vm3309_vm2, %v663_v63, %v667_v49  ;;  %v682_v3 = vsel %vm3309_vm2, %v677_v0, %v681_v55  ;;  %v3131_v49 = vld [vmem:[%s3238_s17 + $0x70] ss:$8 sps:$4 sm:$0xff]  }
  0x66   : > { %2891 = vmatprep.subr.bf16.mxu0 %v3106_v10  ;;  %v2331_v6 = vcombine.low %v668_v2, %v682_v3  ;;  %v3135_v3 = vld [vmem:[%s3570_s1 + $0x218] sm:$0xff]  }
  0x67   : > { %2788 = vmatmul.mubr.bf16.vlgmr.msra.gmra.mrb[0].mxu1 %v2329_v13  ;;  %v3123_v13 = vld [vmem:[%s3570_s1 + $0x1f8] sm:$0xff]  }
  0x68   : > { %2796 = vmatpush3.bf16.msra.mxu1 %v3104_v7  ;;  %2884 = vmatmul.mubr.bf16.vlgmr.msra.gmra.mrb[0].mxu0 %v3107_v11  ;;  %v3124_v7 = vld [vmem:[%s3238_s17 + $0x90] ss:$8 sps:$4 sm:$0xff]  }
  0x69   : > { %2892 = vmatpush3.bf16.msra.mxu0 %v3106_v10  ;;  %2797 = vmatprep.subr.bf16.mxu1 %v3108_v14  ;;  %v3119_v10 = vld [vmem:[%s3570_s1 + $0xf0] sm:$0xff]  }
  0x6a   : > { %2893 = vmatprep.subr.bf16.mxu0 %v3109_v18  ;;  %2887 = vmatprep.mubr.bf16.mxu0 %v3118_v25  ;;  %v3121_v11 = vld [vmem:[%s3570_s1 + $0x1f0] sm:$0xff]   ;;  %v2536_v25 = vld [vmem:[%s3238_s17 + $0x28] sm:$0xf] }
  0x6b   : > { %2791 = vmatprep.mubr.bf16.mxu1 %v2330_v62  ;;  %v1876_v36 = vshrl.u32 %v2536_v25, 16  ;;  %v1879_v37 = vshll.u32 %v2536_v25, 16 }
  0x6c   : > { %2798 = vmatpush3.bf16.msra.mxu1 %v3108_v14  ;;  %v3128_v14 = vld [vmem:[%s3570_s1 + $0x200] sm:$0xff]  }
  0x6d   : > { %2894 = vmatpush3.bf16.msra.mxu0 %v3109_v18  ;;  %2799 = vmatprep.subr.bf16.mxu1 %v3110_v35  ;;  %v2531_v18 = vld [vmem:[%s3238_s17 + $0x14] sm:$0x1]  ;;  %v1878_v47 = vrot.slane %v1876_v36, 4  ;;  %v1881_v48 = vrot.slane %v1879_v37, 5 }
  0x6e   : > { %2895 = vmatprep.subr.bf16.mxu0 %v3111_v41  ;;  %v1843_v24 = vshll.u32 %v2531_v18, 16  ;;  %v3138_v37 = vld [vmem:[%s3570_s1 + $0x230] sm:$0xff]  }
  0x6f   : > { %2792 = vmatmul.mubr.bf16.gmra.mrb[4].mxu1 %v2331_v6  ;;  %v1882_v55 = vor.u32 %v1881_v48, %v1878_v47  ;;  %v2542_v6 = vld [vmem:[%s3238_s17 + $0x40] sm:$0xf] }
  0x70   : > { %2800 = vmatpush3.bf16.msra.mxu1 %v3110_v35  ;;  %2888 = vmatmul.mubr.bf16.gmra.mrb[4].mxu0 %v3120_v58  ;;  %v1826_v35 = vor.u32 %v1825_v27, %v1822_v26  ;;  %v1845_v46 = vrot.slane %v1843_v24, 5 }
  0x71   : > { %2896 = vmatpush3.bf16.msra.mxu0 %v3111_v41  ;;  %2801 = vmatprep.subr.bf16.mxu1 %v3112_v50  ;;  %v1890_v41 = vshrl.u32 %v2538_v29, 16  ;;  %v1883_v60 = vrot.slane %v1882_v55, 4 }
  0x72   : > { %2897 = vmatprep.subr.bf16.mxu0 %v3113_v61  ;;  %2907 = vmatprep.mubr.bf16.mxu0 %v3125_v4  ;;  %v1846_v63 = vsel %vm3309_vm2, %v1841_v51, %v1845_v46  ;;  %v3139_v46 = vld [vmem:[%s3570_s1 + $0x238] sm:$0xff]  }
  0x73   : > { %2811 = vmatprep.mubr.bf16.mxu1 %v3124_v7  ;;  %v1892_v52 = vrot.slane %v1890_v41, 4  ;;  %v1888_v2 = vsel %vm3309_vm2, %v1883_v60, %v1887_v56  ;;  %v1871_v41 = vshll.u32 %v2535_v32, 16 }
  0x74   : > { %2802 = vmatpush3.bf16.msra.mxu1 %v3112_v50  ;;  %v1827_v50 = vrot.slane %v1826_v35, 4 }
  0x75   : > { %2898 = vmatpush3.bf16.msra.mxu0 %v3113_v61  ;;  %2803 = vmatprep.subr.bf16.mxu1 %v3114_v1  ;;  %v1896_v58 = vor.u32 %v1895_v54, %v1892_v52  ;;  %v3132_v61 = vld [vmem:[%s3238_s17 + $0xc0] ss:$8 sps:$4 sm:$0xff]  }
  0x76   : > { %2899 = vmatprep.subr.bf16.mxu0 %v3115_v5  ;;  %v1832_v62 = vsel %vm3309_vm2, %v1827_v50, %v1831_v45  ;;  %v1873_v50 = vrot.slane %v1871_v41, 5 }
  0x77   : > { %v1897_v0 = vrot.slane %v1896_v58, 4  ;;  %v2560_v7 = vcombine.low %v1832_v62, %v1846_v63 }
  0x78   : > { %2804 = vmatpush3.bf16.msra.mxu1 %v3114_v1  ;;  %v3133_v1 = vld [vmem:[%s3238_s17 + $0x80] ss:$8 sps:$4 sm:$0xff]  }
  0x79   : > { %2900 = vmatpush3.bf16.msra.mxu0 %v3115_v5  ;;  %2805 = vmatprep.subr.bf16.mxu1 %v3116_v8  ;;  %v1902_v4 = vsel %vm3309_vm2, %v1897_v0, %v1901_v59  ;;  %v2540_v5 = vld [vmem:[%s3238_s17 + $0x38] sm:$0xf] }
  0x7a   : > { %2901 = vmatprep.subr.bf16.mxu0 %v3117_v9 }
  0x7c   : > { %2806 = vmatpush3.bf16.msra.mxu1 %v3116_v8  ;;  %v2532_v8 = vld [vmem:[%s3238_s17 + $0x18] sm:$0xf] }
  0x7d   : > { %2902 = vmatpush3.bf16.msra.mxu0 %v3117_v9  ;;  %2807 = vmatprep.subr.bf16.mxu1 %v3119_v10  ;;  %v2534_v9 = vld [vmem:[%s3238_s17 + $0x20] sm:$0xf]  ;;  %v1848_v16 = vshrl.u32 %v2532_v8, 16  ;;  %v1851_v17 = vshll.u32 %v2532_v8, 16 }
  0x7e   : > { %2903 = vmatprep.subr.bf16.mxu0 %v3121_v11  ;;  %v1862_v18 = vshrl.u32 %v2534_v9, 16  ;;  %v1865_v19 = vshll.u32 %v2534_v9, 16  ;;  %v2572_v9 = vld [vmem:[%s3571_s2] ss:$0 sm:$0xff] }
  0x7f   : > { %v1850_v26 = vrot.slane %v1848_v16, 4  ;;  %v1853_v27 = vrot.slane %v1851_v17, 5 }
  0x80   : > { %2808 = vmatpush3.bf16.msra.mxu1 %v3119_v10  ;;  %v2562_v10 = vcombine.low %v1888_v2, %v1902_v4  ;;  %v1864_v28 = vrot.slane %v1862_v18, 4  ;;  %v1867_v29 = vrot.slane %v1865_v19, 5 }
  0x81   : > { %2904 = vmatpush3.bf16.msra.mxu0 %v3121_v11  ;;  %2809 = vmatprep.subr.bf16.mxu1 %v3122_v12  ;;  %v1904_v11 = vshrl.u32 %v2540_v5, 16  ;;  %v1854_v38 = vor.u32 %v1853_v27, %v1850_v26 }
  0x82   : > { %2905 = vmatprep.subr.bf16.mxu0 %v3123_v13  ;;  %v1868_v40 = vor.u32 %v1867_v29, %v1864_v28 }
  0x83   : > { %v1906_v22 = vrot.slane %v1904_v11, 4  ;;  %v1855_v47 = vrot.slane %v1854_v38, 4 }
  0x84   : > { %2810 = vmatpush3.bf16.msra.mxu1 %v3122_v12  ;;  %v1907_v12 = vshll.u32 %v2540_v5, 16 }
  0x85   : > { %2906 = vmatpush3.bf16.msra.mxu0 %v3123_v13  ;;  %2939 = vmatprep.subr.bf16.mxu1 %v3128_v14  ;;  %v1918_v13 = vshrl.u32 %v2542_v6, 16 }
  0x86   : > { %2915 = vmatprep.subr.bf16.mxu0 %v3128_v14  ;;  %v1909_v23 = vrot.slane %v1907_v12, 5 }
  0x87   : > { %2812 = vmatmul.mubr.bf16.vlgmr.msra.gmra.mrb[0].mxu1 %v3126_v30  ;;  %v1920_v24 = vrot.slane %v1918_v13, 4  ;;  %v2543_v30 = vld [vmem:[%s3238_s17 + $0x44] sm:$0x1] }
  0x88   : > { %2908 = vmatmul.mubr.bf16.vlgmr.msra.gmra.mrb[0].mxu0 %v3127_v34  ;;  %2947 = vmatpush3.bf16.msra.mxu1 %v3128_v14  ;;  %v1910_v33 = vor.u32 %v1909_v23, %v1906_v22  ;;  %v1913_v34 = vshll.u32 %v2541_v21, 16  ;;  %v1927_v36 = vshll.u32 %v2543_v30, 16 }
  0x89   : > { %2916 = vmatpush3.bf16.msra.mxu0 %v3128_v14  ;;  %2940 = vmatprep.subr.bf16.mxu1 %v3129_v39  ;;  %v1921_v14 = vshll.u32 %v2542_v6, 16 }
  0x8a   : > { %2917 = vmatprep.subr.bf16.mxu0 %v3129_v39  ;;  %2815 = vmatprep.mubr.bf16.mxu1 %v3130_v44  ;;  %v1911_v42 = vrot.slane %v1910_v33, 4  ;;  %v1915_v43 = vrot.slane %v1913_v34, 5  ;;  %v1929_v45 = vrot.slane %v1927_v36, 5 }
  0x8b   : > { %2911 = vmatprep.mubr.bf16.mxu0 %v3131_v49  ;;  %v1923_v25 = vrot.slane %v1921_v14, 5  ;;  %v1869_v49 = vrot.slane %v1868_v40, 4 }
  0x8c   : > { %2948 = vmatpush3.bf16.msra.mxu1 %v3129_v39  ;;  %v1916_v51 = vsel %vm3309_vm2, %v1911_v42, %v1915_v43 }
  0x8d   : > { %2918 = vmatpush3.bf16.msra.mxu0 %v3129_v39  ;;  %2941 = vmatprep.subr.bf16.mxu1 %v3134_v57  ;;  %v1924_v35 = vor.u32 %v1923_v25, %v1920_v24  ;;  %v1857_v39 = vshll.u32 %v2533_v31, 16  ;;  %v1874_v55 = vsel %vm3309_vm2, %v1869_v49, %v1873_v50 }
  0x8e   : > { %2919 = vmatprep.subr.bf16.mxu0 %v3134_v57 }
  0x8f   : > { %2816 = vmatmul.mubr.bf16.gmra.mrb[4].mxu1 %v3132_v61  ;;  %v1925_v44 = vrot.slane %v1924_v35, 4  ;;  %v1859_v48 = vrot.slane %v1857_v39, 5 }
  0x90   : > { %2912 = vmatmul.mubr.bf16.gmra.mrb[4].mxu0 %v3133_v1  ;;  %2949 = vmatpush3.bf16.msra.mxu1 %v3134_v57 }
  0x91   : > { %2920 = vmatpush3.bf16.msra.mxu0 %v3134_v57  ;;  %2942 = vmatprep.subr.bf16.mxu1 %v3135_v3  ;;  %v1930_v52 = vsel %vm3309_vm2, %v1925_v44, %v1929_v45  ;;  %v1860_v54 = vsel %vm3309_vm2, %v1855_v47, %v1859_v48 }
  0x92   : > { %2921 = vmatprep.subr.bf16.mxu0 %v3135_v3  ;;  %2931 = vmatprep.mubr.bf16.mxu0 %v2560_v7  ;;  %v2563_v56 = vcombine.low %v1916_v51, %v1930_v52  ;;  %v2561_v57 = vcombine.low %v1860_v54, %v1874_v55 }
  0x93   : > { %2935 = vmatprep.mubr.bf16.mxu1 %v2562_v10 }
  0x94   : > { %2950 = vmatpush3.bf16.msra.mxu1 %v3135_v3 }
  0x95   : > { %2922 = vmatpush3.bf16.msra.mxu0 %v3135_v3  ;;  %2943 = vmatprep.subr.bf16.mxu1 %v3136_v15 }
  0x96   : > { %2923 = vmatprep.subr.bf16.mxu0 %v3136_v15 }
  0x98   : > { %2951 = vmatpush3.bf16.msra.mxu1 %v3136_v15 }
  0x99   : > { %2924 = vmatpush3.bf16.msra.mxu0 %v3136_v15  ;;  %2944 = vmatprep.subr.bf16.mxu1 %v3137_v20 }
  0x9a   : > { %2925 = vmatprep.subr.bf16.mxu0 %v3137_v20 }
  0x9c   : > { %2952 = vmatpush3.bf16.msra.mxu1 %v3137_v20 }
  0x9d   : > { %2926 = vmatpush3.bf16.msra.mxu0 %v3137_v20  ;;  %2945 = vmatprep.subr.bf16.mxu1 %v3138_v37 }
  0x9e   : > { %2927 = vmatprep.subr.bf16.mxu0 %v3138_v37 }
  0xa0   : > { %2953 = vmatpush3.bf16.msra.mxu1 %v3138_v37 }
  0xa1   : > { %2928 = vmatpush3.bf16.msra.mxu0 %v3138_v37  ;;  %2946 = vmatprep.subr.bf16.mxu1 %v3139_v46 }
  0xa2   : > { %2929 = vmatprep.subr.bf16.mxu0 %v3139_v46 }
  0xa4   : > { %2954 = vmatpush3.bf16.msra.mxu1 %v3139_v46 }
  0xa5   : > { %2930 = vmatpush3.bf16.msra.mxu0 %v3139_v46 }
  0xa7   : > { %2936 = vmatmul.mubr.bf16.vlgmr.msra.gmra.mrb[8].mxu1 %v2563_v56 }
  0xa8   : > { %2932 = vmatmul.mubr.bf16.vlgmr.msra.gmra.mrb[0].mxu0 %v2561_v57 }
 0x15a   : > { %v2813_v58 = vpop.f32.mrb[0].mxu1 }
 0x15b   : > { %v969_v59 = vpop.f32.mrb[1].mxu1 }
 0x15c   : > { %v2814_v60 = vpop.f32.mrb[2].mxu1 }
 0x15d   : > { %v972_v61 = vpop.f32.mrb[3].mxu1 }
 0x162   : > { %v2817_v62 = vpop.f32.mrb[4].mxu1 }
 0x163   : > { %v2913_v63 = vpop.f32.mrb[4].mxu0  ;;  %v985_v0 = vpop.f32.mrb[5].mxu1 }
 0x164   : > { %v2959_v1 = vadd.f32 %v2913_v63, %v2817_v62  ;;  %v1780_v2 = vpop.f32.mrb[5].mxu0  ;;  %v2818_v53 = vpop.f32.mrb[6].mxu1 }
 0x165   : > { %v2961_v3 = vadd.f32 %v1780_v2, %v985_v0  ;;  %v2914_v4 = vpop.f32.mrb[6].mxu0  ;;  %v988_v5 = vpop.f32.mrb[7].mxu1 }
 0x166   : > { %v2963_v6 = vadd.f32 %v2914_v4, %v2818_v53  ;;  %v1783_v7 = vpop.f32.mrb[7].mxu0 }
 0x167   : > { %v2965_v8 = vadd.f32 %v1783_v7, %v988_v5 }
 0x17a   : > { %v2937_v10 = vpop.f32.mrb[8].mxu1 }
 0x17b   : > { %v2933_v11 = vpop.f32.mrb[0].mxu0  ;;  %v2960_v12 = vadd.f32 %v2959_v1, %v2937_v10  ;;  %v2062_v13 = vpop.f32.mrb[9].mxu1 }
 0x17c   : > { %v2955_v14 = vadd.f32 %v2933_v11, %v2813_v58  ;;  %v2046_v15 = vpop.f32.mrb[1].mxu0  ;;  %v2962_v16 = vadd.f32 %v2961_v3, %v2062_v13  ;;  %v2938_v17 = vpop.f32.mrb[10].mxu1 }
 0x17d   : > { %v2098_v18 = vadd.f32 %v2960_v12, %v2572_v9  ;;  %v2956_v19 = vadd.f32 %v2046_v15, %v969_v59  ;;  %v2934_v20 = vpop.f32.mrb[2].mxu0  ;;  %v2964_v21 = vadd.f32 %v2963_v6, %v2938_v17  ;;  %v2065_v22 = vpop.f32.mrb[11].mxu1 }
 0x17e   : > { %v2094_v23 = vadd.f32 %v2955_v14, %v2572_v9  ;;  %v2096_v24 = vadd.f32 %v2962_v16, %v2572_v9  ;;  %v2957_v25 = vadd.f32 %v2934_v20, %v2814_v60  ;;  %v2049_v26 = vpop.f32.mrb[3].mxu0  ;;  %v2966_v27 = vadd.f32 %v2965_v8, %v2065_v22 }
 0x17f   : > { %v2092_v28 = vadd.f32 %v2956_v19, %v2572_v9  ;;  %v2099_v29 = vadd.f32 %v2964_v21, %v2572_v9  ;;  %v2958_v30 = vadd.f32 %v2049_v26, %v972_v61  ;;  %v2106_v33 = vmax.f32 %v2098_v18, 0.0 }
 0x180   : > { %v2095_v31 = vadd.f32 %v2957_v25, %v2572_v9  ;;  %v2097_v32 = vadd.f32 %v2966_v27, %v2572_v9  ;;  %v2102_v36 = vmax.f32 %v2094_v23, 0.0  ;;  %v2104_v37 = vmax.f32 %v2096_v24, 0.0 }
 0x181   : > { %v2107_v34 = vmax.f32 %v2099_v29, 0.0  ;;  %v2093_v35 = vadd.f32 %v2958_v30, %v2572_v9  ;;  %v2100_v40 = vmax.f32 %v2092_v28, 0.0 }
 0x182   : > { %v2103_v38 = vmax.f32 %v2095_v31, 0.0  ;;  %v2105_v39 = vmax.f32 %v2097_v32, 0.0 }
 0x183   : > { %v2610_v41 = vpack.c.bf16 %v2107_v34, %v2106_v33  ;;  %v2101_v42 = vmax.f32 %v2093_v35, 0.0 }
 0x184   : > { %v2600_v43 = vpack.c.bf16 %v2103_v38, %v2102_v36  ;;  %v2605_v44 = vpack.c.bf16 %v2105_v39, %v2104_v37 }
 0x185   : > { %2614 = vst [vmem:[%s226_s9 + $0x18] sm:$0xff] %v2610_v41   ;;  %v2595_v45 = vpack.c.bf16 %v2101_v42, %v2100_v40 }
 0x186   : > { %2612 = vst [vmem:[%s226_s9 + $0x8] sm:$0xff] %v2600_v43   ;;  %2613 = vst [vmem:[%s226_s9 + $0x10] sm:$0xff] %v2605_v44  }
 0x187   : > { %2596 = vst [vmem:[%s226_s9] sm:$0xff] %v2595_v45  }
 0x188 PF: > { %s13_s14 = sadd.s32 1, %s3162_s14   ;;  %s3575_s12 = smov %s3158_s13 }
 0x189   : > { %p10_p6 = scmp.ge.s32.totalorder %s13_s14, 4   ;;  %s3576_s13 = smov %s3578_s15 }
 0x18b   :  { %12 = sbr.rel (!%p10_p6) target bundleno = 2 (0x2), region = 81 }

// kernel: bottleneck_forward.5
= control target key start
LH: loop header
LB: loop body
LE: loop exit
PB: predicated region body
PF: predicated region fallthrough
CT: control target
= control target key end

     0   :  { %s1793_s18 = smov 0   ;;  %s1795_s19 = smov 0   ;;  %s1951_s0 = inlined_call_operand.vmem [shape: bf16[128,128], index: 0, kind: input, shape index: {}]   ;;  %s1952_s1 = inlined_call_operand.vmem [shape: bf16[128,128], index: 1, kind: input, shape index: {}]   ;;  %s1953_s2 = inlined_call_operand.vmem [shape: bf16[128,128], index: 2, kind: input, shape index: {}]   ;;  %s1954_s3 = inlined_call_operand.vmem [shape: bf16[128,128], index: 3, kind: input, shape index: {}]   ;;  %s1955_s4 = inlined_call_operand.vmem [shape: f32[1,128], index: 4, kind: input, shape index: {}]   ;;  %s1956_s5 = inlined_call_operand.vmem [shape: bf16[128,128], index: 5, kind: output, shape index: {}]  }
   0x1   :  { %s1797_s20 = smov 0  }
   0x2 LB: > { %s27_s21 = sadd.s32 1, %s1756_s19  ;;  %p1406_p0 = scmp.ge.s32.totalorder %s1760_s20, 1  ;;  %s1760_s20 = sphi %s1797_s20, %s15_s20   ;;  %s1756_s19 = sphi %s1795_s19, %s1958_s19   ;;  %s1752_s18 = sphi %s1793_s18, %s1957_s18  }
   0x3   : > { %p28_p1 = scmp.ge.s32.totalorder %s27_s21, 2  ;;  %p342_p2 = scmp.lt.s32.totalorder %s1760_s20, 3 }
   0x5   : > { %s1960_s21 = smov (%p28_p1, %s27_s21), 0  ;;  %p343_p3 = pnand %p1406_p0, %p342_p2 }
   0x6   : > { %p1435_p4 = scmp.ne.s32.totalorder (!%p343_p3), %s1752_s18, 0 }
   0x7   : > { %346 = sbr.rel (%p343_p3) target bundleno = 564 (0x234), region = 40 }
   0xe   : > { %509 = sbr.rel (%p1435_p4) target bundleno = 23 (0x17), region = 44  ;;  %v1762_v0 = vmov (!%p1435_p4), 0.0  }
   0xf   : > { %510 = vst [vmem:[#allocation2] sm:$0xff] (!%p1435_p4), %v1762_v0  ;;  %511 = vst [vmem:[#allocation2 + $0x8] sm:$0xff] (!%p1435_p4), %v1762_v0 }
  0x10   : > { %512 = vst [vmem:[#allocation2 + $0x10] sm:$0xff] (!%p1435_p4), %v1762_v0  ;;  %513 = vst [vmem:[#allocation2 + $0x18] sm:$0xff] (!%p1435_p4), %v1762_v0 }
  0x11   : > { %514 = vst [vmem:[#allocation2 + $0x20] sm:$0xff] (!%p1435_p4), %v1762_v0  ;;  %515 = vst [vmem:[#allocation2 + $0x28] sm:$0xff] (!%p1435_p4), %v1762_v0 }
  0x12   : > { %516 = vst [vmem:[#allocation2 + $0x30] sm:$0xff] (!%p1435_p4), %v1762_v0  ;;  %517 = vst [vmem:[#allocation2 + $0x38] sm:$0xff] (!%p1435_p4), %v1762_v0 }
  0x13   : > { %518 = vst [vmem:[#allocation2 + $0x40] sm:$0xff] (!%p1435_p4), %v1762_v0  ;;  %519 = vst [vmem:[#allocation2 + $0x48] sm:$0xff] (!%p1435_p4), %v1762_v0 }
  0x14   : > { %520 = vst [vmem:[#allocation2 + $0x50] sm:$0xff] (!%p1435_p4), %v1762_v0  ;;  %521 = vst [vmem:[#allocation2 + $0x58] sm:$0xff] (!%p1435_p4), %v1762_v0 }
  0x15   : > { %522 = vst [vmem:[#allocation2 + $0x60] sm:$0xff] %v1762_v0  ;;  %523 = vst [vmem:[#allocation2 + $0x68] sm:$0xff] %v1762_v0 }
  0x16   : > { %524 = vst [vmem:[#allocation2 + $0x70] sm:$0xff] %v1762_v0  ;;  %525 = vst [vmem:[#allocation2 + $0x78] sm:$0xff] %v1762_v0 }
  0x17 PF: > { %p526_p5 = scmp.ge.s32.totalorder %s1752_s18, 0  ;;  %p527_p6 = scmp.lt.s32.totalorder %s1752_s18, 1 }
  0x19   : > { %p528_p7 = pnand %p527_p6, %p526_p5 }
  0x1a   : > { %v1706_v1 = vld [vmem:[%s1952_s1] sm:$0xff] (!%p528_p7)   ;;  %v1707_v2 = vld [vmem:[%s1952_s1 + $0x8] sm:$0xff] (!%p528_p7)   ;;  %v1708_v3 = vld [vmem:[%s1952_s1 + $0x10] sm:$0xff] (!%p528_p7)  }
  0x1b   : > { %531 = sbr.rel (%p528_p7) target bundleno = 285 (0x11d), region = 48  ;;  %1585 = vmatprep.subr.bf16.mxu0 (!%p528_p7), %v1706_v1  ;;  %1649 = vmatprep.subr.bf16.mxu1 (!%p528_p7), %v1706_v1  ;;  %v1709_v4 = vld [vmem:[%s1952_s1 + $0x18] sm:$0xff] (!%p528_p7)   ;;  %v1714_v5 = vld [vmem:[%s1951_s0] sm:$0xff] (!%p528_p7)   ;;  %v1711_v8 = vld [vmem:[%s1952_s1 + $0x28] sm:$0xff] (!%p528_p7)  }
  0x1c   : > { %1586 = vmatpush3.bf16.msra.mxu0 (!%p528_p7), %v1706_v1  ;;  %1657 = vmatpush3.bf16.msra.mxu1 (!%p528_p7), %v1706_v1  ;;  %v1715_v6 = vld [vmem:[%s1951_s0 + $0x20] sm:$0xff] (!%p528_p7)   ;;  %v1712_v9 = vld [vmem:[%s1952_s1 + $0x30] sm:$0xff] (!%p528_p7)   ;;  %v1713_v10 = vld [vmem:[%s1952_s1 + $0x38] sm:$0xff] (!%p528_p7)  }
  0x1d   : > { %1587 = vmatprep.subr.bf16.mxu0 (!%p528_p7), %v1707_v2  ;;  %1650 = vmatprep.subr.bf16.mxu1 (!%p528_p7), %v1707_v2  ;;  %v1710_v7 = vld [vmem:[%s1952_s1 + $0x20] sm:$0xff] (!%p528_p7)   ;;  %v1716_v11 = vld [vmem:[%s1951_s0 + $0x8] sm:$0xff] (!%p528_p7)   ;;  %v1718_v13 = vld [vmem:[%s1951_s0 + $0x10] sm:$0xff] (!%p528_p7)  }
  0x1e   : > { %1601 = vmatprep.mubr.bf16.mxu0 (!%p528_p7), %v1714_v5  ;;  %1609 = vmatprep.mubr.bf16.mxu1 (!%p528_p7), %v1715_v6  ;;  %v1717_v12 = vld [vmem:[%s1951_s0 + $0x28] sm:$0xff] (!%p528_p7)   ;;  %v1719_v14 = vld [vmem:[%s1951_s0 + $0x30] sm:$0xff] (!%p528_p7)   ;;  %v1720_v15 = vld [vmem:[%s1951_s0 + $0x18] sm:$0xff] (!%p528_p7)  }
  0x1f   : > { %v1721_v16 = vld [vmem:[%s1951_s0 + $0x38] sm:$0xff] (!%p528_p7)   ;;  %v534_v17 = vld [vmem:[#allocation2 + $0x10] sm:$0xff] (!%p528_p7)  ;;  %v532_v19 = vld [vmem:[#allocation2] sm:$0xff] (!%p528_p7) }
  0x20   : > { %1588 = vmatpush3.bf16.msra.mxu0 (!%p528_p7), %v1707_v2  ;;  %1658 = vmatpush3.bf16.msra.mxu1 (!%p528_p7), %v1707_v2  ;;  %v542_v18 = vld [vmem:[#allocation2 + $0x50] sm:$0xff] (!%p528_p7)  ;;  %v540_v20 = vld [vmem:[#allocation2 + $0x40] sm:$0xff] (!%p528_p7)  ;;  %v535_v23 = vld [vmem:[#allocation2 + $0x18] sm:$0xff] (!%p528_p7) }
  0x21   : > { %1589 = vmatprep.subr.bf16.mxu0 (!%p528_p7), %v1708_v3  ;;  %1651 = vmatprep.subr.bf16.mxu1 (!%p528_p7), %v1708_v3  ;;  %v543_v24 = vld [vmem:[#allocation2 + $0x58] sm:$0xff] (!%p528_p7)  ;;  %v533_v29 = vld [vmem:[#allocation2 + $0x8] sm:$0xff] (!%p528_p7)  ;;  %v538_v41 = vld [vmem:[#allocation2 + $0x30] sm:$0xff] (!%p528_p7) }
  0x22   : > { %v541_v30 = vld [vmem:[#allocation2 + $0x48] sm:$0xff]  ;;  %v546_v42 = vld [vmem:[#allocation2 + $0x70] sm:$0xff]  ;;  %v536_v43 = vld [vmem:[#allocation2 + $0x20] sm:$0xff] }
  0x23   : > { %v544_v44 = vld [vmem:[#allocation2 + $0x60] sm:$0xff]  ;;  %v539_v47 = vld [vmem:[#allocation2 + $0x38] sm:$0xff]  ;;  %v537_v53 = vld [vmem:[#allocation2 + $0x28] sm:$0xff] }
  0x24   : > { %1590 = vmatpush3.bf16.msra.mxu0 %v1708_v3  ;;  %1659 = vmatpush3.bf16.msra.mxu1 %v1708_v3  ;;  %v547_v48 = vld [vmem:[#allocation2 + $0x78] sm:$0xff]  ;;  %v545_v54 = vld [vmem:[#allocation2 + $0x68] sm:$0xff] }
  0x25   : > { %1591 = vmatprep.subr.bf16.mxu0 %v1709_v4  ;;  %1652 = vmatprep.subr.bf16.mxu1 %v1709_v4 }
  0x28   : > { %1592 = vmatpush3.bf16.msra.mxu0 %v1709_v4  ;;  %1660 = vmatpush3.bf16.msra.mxu1 %v1709_v4 }
  0x29   : > { %1593 = vmatprep.subr.bf16.mxu0 %v1710_v7  ;;  %1653 = vmatprep.subr.bf16.mxu1 %v1710_v7 }
  0x2c   : > { %1594 = vmatpush3.bf16.msra.mxu0 %v1710_v7  ;;  %1661 = vmatpush3.bf16.msra.mxu1 %v1710_v7 }
  0x2d   : > { %1595 = vmatprep.subr.bf16.mxu0 %v1711_v8  ;;  %1654 = vmatprep.subr.bf16.mxu1 %v1711_v8 }
  0x30   : > { %1596 = vmatpush3.bf16.msra.mxu0 %v1711_v8  ;;  %1662 = vmatpush3.bf16.msra.mxu1 %v1711_v8 }
  0x31   : > { %1597 = vmatprep.subr.bf16.mxu0 %v1712_v9  ;;  %1655 = vmatprep.subr.bf16.mxu1 %v1712_v9 }
  0x34   : > { %1598 = vmatpush3.bf16.msra.mxu0 %v1712_v9  ;;  %1663 = vmatpush3.bf16.msra.mxu1 %v1712_v9 }
  0x35   : > { %1599 = vmatprep.subr.bf16.mxu0 %v1713_v10  ;;  %1656 = vmatprep.subr.bf16.mxu1 %v1713_v10 }
  0x38   : > { %1600 = vmatpush3.bf16.msra.mxu0 %v1713_v10  ;;  %1664 = vmatpush3.bf16.msra.mxu1 %v1713_v10 }
  0x3b   : > { %1602 = vmatmul.mubr.bf16.vlgmr.msra.gmra.mrb[0].mxu0 %v1716_v11  ;;  %1610 = vmatmul.mubr.bf16.vlgmr.msra.gmra.mrb[0].mxu1 %v1717_v12 }
  0x3c   : > { %1605 = vmatprep.mubr.bf16.mxu0 %v1718_v13  ;;  %1613 = vmatprep.mubr.bf16.mxu1 %v1719_v14 }
  0x43   : > { %1606 = vmatmul.mubr.bf16.gmra.mrb[4].mxu0 %v1720_v15  ;;  %1614 = vmatmul.mubr.bf16.gmra.mrb[4].mxu1 %v1721_v16 }
 0x10e   : > { %v1603_v21 = vpop.f32.mrb[0].mxu0  ;;  %v1611_v22 = vpop.f32.mrb[0].mxu1 }
 0x10f   : > { %v775_v25 = vadd.f32 %v1603_v21, %v534_v17  ;;  %v783_v26 = vadd.f32 %v1611_v22, %v542_v18  ;;  %v710_v27 = vpop.f32.mrb[1].mxu0  ;;  %v742_v28 = vpop.f32.mrb[1].mxu1 }
 0x110   : > { %v773_v31 = vadd.f32 %v710_v27, %v532_v19  ;;  %v781_v32 = vadd.f32 %v742_v28, %v540_v20  ;;  %v1604_v33 = vpop.f32.mrb[2].mxu0  ;;  %v1612_v34 = vpop.f32.mrb[2].mxu1 }
 0x111   : > { %791 = vst [vmem:[#allocation2 + $0x10] sm:$0xff] %v775_v25  ;;  %799 = vst [vmem:[#allocation2 + $0x50] sm:$0xff] %v783_v26  ;;  %v776_v35 = vadd.f32 %v1604_v33, %v535_v23  ;;  %v784_v36 = vadd.f32 %v1612_v34, %v543_v24  ;;  %v713_v37 = vpop.f32.mrb[3].mxu0  ;;  %v745_v38 = vpop.f32.mrb[3].mxu1 }
 0x112   : > { %789 = vst [vmem:[#allocation2] sm:$0xff] %v773_v31  ;;  %797 = vst [vmem:[#allocation2 + $0x40] sm:$0xff] %v781_v32  ;;  %v774_v39 = vadd.f32 %v713_v37, %v533_v29  ;;  %v782_v40 = vadd.f32 %v745_v38, %v541_v30 }
 0x113   : > { %792 = vst [vmem:[#allocation2 + $0x18] sm:$0xff] %v776_v35  ;;  %800 = vst [vmem:[#allocation2 + $0x58] sm:$0xff] %v784_v36 }
 0x114   : > { %790 = vst [vmem:[#allocation2 + $0x8] sm:$0xff] %v774_v39  ;;  %798 = vst [vmem:[#allocation2 + $0x48] sm:$0xff] %v782_v40 }
 0x116   : > { %v1607_v45 = vpop.f32.mrb[4].mxu0  ;;  %v1615_v46 = vpop.f32.mrb[4].mxu1 }
 0x117   : > { %v779_v49 = vadd.f32 %v1607_v45, %v538_v41  ;;  %v787_v50 = vadd.f32 %v1615_v46, %v546_v42  ;;  %v726_v51 = vpop.f32.mrb[5].mxu0  ;;  %v758_v52 = vpop.f32.mrb[5].mxu1 }
 0x118   : > { %v777_v55 = vadd.f32 %v726_v51, %v536_v43  ;;  %v785_v56 = vadd.f32 %v758_v52, %v544_v44  ;;  %v1608_v57 = vpop.f32.mrb[6].mxu0  ;;  %v1616_v58 = vpop.f32.mrb[6].mxu1 }
 0x119   : > { %795 = vst [vmem:[#allocation2 + $0x30] sm:$0xff] %v779_v49  ;;  %803 = vst [vmem:[#allocation2 + $0x70] sm:$0xff] %v787_v50  ;;  %v780_v59 = vadd.f32 %v1608_v57, %v539_v47  ;;  %v788_v60 = vadd.f32 %v1616_v58, %v547_v48  ;;  %v729_v61 = vpop.f32.mrb[7].mxu0  ;;  %v761_v62 = vpop.f32.mrb[7].mxu1 }
 0x11a   : > { %793 = vst [vmem:[#allocation2 + $0x20] sm:$0xff] %v777_v55  ;;  %801 = vst [vmem:[#allocation2 + $0x60] sm:$0xff] %v785_v56  ;;  %v778_v63 = vadd.f32 %v729_v61, %v537_v53  ;;  %v786_v0 = vadd.f32 %v761_v62, %v545_v54 }
 0x11b   : > { %796 = vst [vmem:[#allocation2 + $0x38] sm:$0xff] %v780_v59  ;;  %804 = vst [vmem:[#allocation2 + $0x78] sm:$0xff] %v788_v60 }
 0x11c   : > { %794 = vst [vmem:[#allocation2 + $0x28] sm:$0xff] %v778_v63  ;;  %802 = vst [vmem:[#allocation2 + $0x68] sm:$0xff] %v786_v0 }
 0x11d PF: > { %p805_p8 = scmp.ge.s32.totalorder %s1752_s18, 1  ;;  %p806_p9 = scmp.lt.s32.totalorder %s1752_s18, 2 }
 0x11f   : > { %p807_p10 = pnand %p806_p9, %p805_p8 }
 0x120   : > { %v1722_v1 = vld [vmem:[%s1954_s3] sm:$0xff] (!%p807_p10)   ;;  %v1723_v2 = vld [vmem:[%s1954_s3 + $0x8] sm:$0xff] (!%p807_p10)   ;;  %v1724_v3 = vld [vmem:[%s1954_s3 + $0x10] sm:$0xff] (!%p807_p10)  }
 0x121   : > { %810 = sbr.rel (%p807_p10) target bundleno = 547 (0x223), region = 52  ;;  %1617 = vmatprep.subr.bf16.mxu0 (!%p807_p10), %v1722_v1  ;;  %1665 = vmatprep.subr.bf16.mxu1 (!%p807_p10), %v1722_v1  ;;  %v1725_v4 = vld [vmem:[%s1954_s3 + $0x18] sm:$0xff] (!%p807_p10)   ;;  %v1730_v5 = vld [vmem:[%s1953_s2] sm:$0xff] (!%p807_p10)   ;;  %v1727_v8 = vld [vmem:[%s1954_s3 + $0x28] sm:$0xff] (!%p807_p10)  }
 0x122   : > { %1618 = vmatpush3.bf16.msra.mxu0 (!%p807_p10), %v1722_v1  ;;  %1673 = vmatpush3.bf16.msra.mxu1 (!%p807_p10), %v1722_v1  ;;  %v1731_v6 = vld [vmem:[%s1953_s2 + $0x20] sm:$0xff] (!%p807_p10)   ;;  %v1728_v9 = vld [vmem:[%s1954_s3 + $0x30] sm:$0xff] (!%p807_p10)   ;;  %v1729_v10 = vld [vmem:[%s1954_s3 + $0x38] sm:$0xff] (!%p807_p10)  }
 0x123   : > { %1619 = vmatprep.subr.bf16.mxu0 (!%p807_p10), %v1723_v2  ;;  %1666 = vmatprep.subr.bf16.mxu1 (!%p807_p10), %v1723_v2  ;;  %v1726_v7 = vld [vmem:[%s1954_s3 + $0x20] sm:$0xff] (!%p807_p10)   ;;  %v1732_v11 = vld [vmem:[%s1953_s2 + $0x8] sm:$0xff] (!%p807_p10)   ;;  %v1734_v13 = vld [vmem:[%s1953_s2 + $0x10] sm:$0xff] (!%p807_p10)  }
 0x124   : > { %1633 = vmatprep.mubr.bf16.mxu0 (!%p807_p10), %v1730_v5  ;;  %1641 = vmatprep.mubr.bf16.mxu1 (!%p807_p10), %v1731_v6  ;;  %v1733_v12 = vld [vmem:[%s1953_s2 + $0x28] sm:$0xff] (!%p807_p10)   ;;  %v1735_v14 = vld [vmem:[%s1953_s2 + $0x30] sm:$0xff] (!%p807_p10)   ;;  %v1736_v15 = vld [vmem:[%s1953_s2 + $0x18] sm:$0xff] (!%p807_p10)  }
 0x125   : > { %v1737_v16 = vld [vmem:[%s1953_s2 + $0x38] sm:$0xff] (!%p807_p10)   ;;  %v813_v17 = vld [vmem:[#allocation2 + $0x10] sm:$0xff] (!%p807_p10)  ;;  %v811_v19 = vld [vmem:[#allocation2] sm:$0xff] (!%p807_p10) }
 0x126   : > { %1620 = vmatpush3.bf16.msra.mxu0 (!%p807_p10), %v1723_v2  ;;  %1674 = vmatpush3.bf16.msra.mxu1 (!%p807_p10), %v1723_v2  ;;  %v821_v18 = vld [vmem:[#allocation2 + $0x50] sm:$0xff] (!%p807_p10)  ;;  %v819_v20 = vld [vmem:[#allocation2 + $0x40] sm:$0xff] (!%p807_p10)  ;;  %v814_v23 = vld [vmem:[#allocation2 + $0x18] sm:$0xff] (!%p807_p10) }
 0x127   : > { %1621 = vmatprep.subr.bf16.mxu0 (!%p807_p10), %v1724_v3  ;;  %1667 = vmatprep.subr.bf16.mxu1 (!%p807_p10), %v1724_v3  ;;  %v822_v24 = vld [vmem:[#allocation2 + $0x58] sm:$0xff] (!%p807_p10)  ;;  %v812_v29 = vld [vmem:[#allocation2 + $0x8] sm:$0xff] (!%p807_p10)  ;;  %v817_v41 = vld [vmem:[#allocation2 + $0x30] sm:$0xff] (!%p807_p10) }
 0x128   : > { %v820_v30 = vld [vmem:[#allocation2 + $0x48] sm:$0xff]  ;;  %v825_v42 = vld [vmem:[#allocation2 + $0x70] sm:$0xff]  ;;  %v815_v43 = vld [vmem:[#allocation2 + $0x20] sm:$0xff] }
 0x129   : > { %v823_v44 = vld [vmem:[#allocation2 + $0x60] sm:$0xff]  ;;  %v818_v47 = vld [vmem:[#allocation2 + $0x38] sm:$0xff]  ;;  %v816_v53 = vld [vmem:[#allocation2 + $0x28] sm:$0xff] }
 0x12a   : > { %1622 = vmatpush3.bf16.msra.mxu0 %v1724_v3  ;;  %1675 = vmatpush3.bf16.msra.mxu1 %v1724_v3  ;;  %v826_v48 = vld [vmem:[#allocation2 + $0x78] sm:$0xff]  ;;  %v824_v54 = vld [vmem:[#allocation2 + $0x68] sm:$0xff] }
 0x12b   : > { %1623 = vmatprep.subr.bf16.mxu0 %v1725_v4  ;;  %1668 = vmatprep.subr.bf16.mxu1 %v1725_v4 }
 0x12e   : > { %1624 = vmatpush3.bf16.msra.mxu0 %v1725_v4  ;;  %1676 = vmatpush3.bf16.msra.mxu1 %v1725_v4 }
 0x12f   : > { %1625 = vmatprep.subr.bf16.mxu0 %v1726_v7  ;;  %1669 = vmatprep.subr.bf16.mxu1 %v1726_v7 }
 0x132   : > { %1626 = vmatpush3.bf16.msra.mxu0 %v1726_v7  ;;  %1677 = vmatpush3.bf16.msra.mxu1 %v1726_v7 }
 0x133   : > { %1627 = vmatprep.subr.bf16.mxu0 %v1727_v8  ;;  %1670 = vmatprep.subr.bf16.mxu1 %v1727_v8 }
 0x136   : > { %1628 = vmatpush3.bf16.msra.mxu0 %v1727_v8  ;;  %1678 = vmatpush3.bf16.msra.mxu1 %v1727_v8 }
 0x137   : > { %1629 = vmatprep.subr.bf16.mxu0 %v1728_v9  ;;  %1671 = vmatprep.subr.bf16.mxu1 %v1728_v9 }
 0x13a   : > { %1630 = vmatpush3.bf16.msra.mxu0 %v1728_v9  ;;  %1679 = vmatpush3.bf16.msra.mxu1 %v1728_v9 }
 0x13b   : > { %1631 = vmatprep.subr.bf16.mxu0 %v1729_v10  ;;  %1672 = vmatprep.subr.bf16.mxu1 %v1729_v10 }
 0x13e   : > { %1632 = vmatpush3.bf16.msra.mxu0 %v1729_v10  ;;  %1680 = vmatpush3.bf16.msra.mxu1 %v1729_v10 }
 0x141   : > { %1634 = vmatmul.mubr.bf16.vlgmr.msra.gmra.mrb[0].mxu0 %v1732_v11  ;;  %1642 = vmatmul.mubr.bf16.vlgmr.msra.gmra.mrb[0].mxu1 %v1733_v12 }
 0x142   : > { %1637 = vmatprep.mubr.bf16.mxu0 %v1734_v13  ;;  %1645 = vmatprep.mubr.bf16.mxu1 %v1735_v14 }
 0x149   : > { %1638 = vmatmul.mubr.bf16.gmra.mrb[4].mxu0 %v1736_v15  ;;  %1646 = vmatmul.mubr.bf16.gmra.mrb[4].mxu1 %v1737_v16 }
 0x214   : > { %v1635_v21 = vpop.f32.mrb[0].mxu0  ;;  %v1643_v22 = vpop.f32.mrb[0].mxu1 }
 0x215   : > { %v1054_v25 = vadd.f32 %v1635_v21, %v813_v17  ;;  %v1062_v26 = vadd.f32 %v1643_v22, %v821_v18  ;;  %v989_v27 = vpop.f32.mrb[1].mxu0  ;;  %v1021_v28 = vpop.f32.mrb[1].mxu1 }
 0x216   : > { %v1052_v31 = vadd.f32 %v989_v27, %v811_v19  ;;  %v1060_v32 = vadd.f32 %v1021_v28, %v819_v20  ;;  %v1636_v33 = vpop.f32.mrb[2].mxu0  ;;  %v1644_v34 = vpop.f32.mrb[2].mxu1 }
 0x217   : > { %1070 = vst [vmem:[#allocation2 + $0x10] sm:$0xff] %v1054_v25  ;;  %1078 = vst [vmem:[#allocation2 + $0x50] sm:$0xff] %v1062_v26  ;;  %v1055_v35 = vadd.f32 %v1636_v33, %v814_v23  ;;  %v1063_v36 = vadd.f32 %v1644_v34, %v822_v24  ;;  %v992_v37 = vpop.f32.mrb[3].mxu0  ;;  %v1024_v38 = vpop.f32.mrb[3].mxu1 }
 0x218   : > { %1068 = vst [vmem:[#allocation2] sm:$0xff] %v1052_v31  ;;  %1076 = vst [vmem:[#allocation2 + $0x40] sm:$0xff] %v1060_v32  ;;  %v1053_v39 = vadd.f32 %v992_v37, %v812_v29  ;;  %v1061_v40 = vadd.f32 %v1024_v38, %v820_v30 }
 0x219   : > { %1071 = vst [vmem:[#allocation2 + $0x18] sm:$0xff] %v1055_v35  ;;  %1079 = vst [vmem:[#allocation2 + $0x58] sm:$0xff] %v1063_v36 }
 0x21a   : > { %1069 = vst [vmem:[#allocation2 + $0x8] sm:$0xff] %v1053_v39  ;;  %1077 = vst [vmem:[#allocation2 + $0x48] sm:$0xff] %v1061_v40 }
 0x21c   : > { %v1639_v45 = vpop.f32.mrb[4].mxu0  ;;  %v1647_v46 = vpop.f32.mrb[4].mxu1 }
 0x21d   : > { %v1058_v49 = vadd.f32 %v1639_v45, %v817_v41  ;;  %v1066_v50 = vadd.f32 %v1647_v46, %v825_v42  ;;  %v1005_v51 = vpop.f32.mrb[5].mxu0  ;;  %v1037_v52 = vpop.f32.mrb[5].mxu1 }
 0x21e   : > { %v1056_v55 = vadd.f32 %v1005_v51, %v815_v43  ;;  %v1064_v56 = vadd.f32 %v1037_v52, %v823_v44  ;;  %v1640_v57 = vpop.f32.mrb[6].mxu0  ;;  %v1648_v58 = vpop.f32.mrb[6].mxu1 }
 0x21f   : > { %1074 = vst [vmem:[#allocation2 + $0x30] sm:$0xff] %v1058_v49  ;;  %1082 = vst [vmem:[#allocation2 + $0x70] sm:$0xff] %v1066_v50  ;;  %v1059_v59 = vadd.f32 %v1640_v57, %v818_v47  ;;  %v1067_v60 = vadd.f32 %v1648_v58, %v826_v48  ;;  %v1008_v61 = vpop.f32.mrb[7].mxu0  ;;  %v1040_v62 = vpop.f32.mrb[7].mxu1 }
 0x220   : > { %1072 = vst [vmem:[#allocation2 + $0x20] sm:$0xff] %v1056_v55  ;;  %1080 = vst [vmem:[#allocation2 + $0x60] sm:$0xff] %v1064_v56  ;;  %v1057_v63 = vadd.f32 %v1008_v61, %v816_v53  ;;  %v1065_v0 = vadd.f32 %v1040_v62, %v824_v54 }
 0x221   : > { %1075 = vst [vmem:[#allocation2 + $0x38] sm:$0xff] %v1059_v59  ;;  %1083 = vst [vmem:[#allocation2 + $0x78] sm:$0xff] %v1067_v60 }
 0x222   : > { %1073 = vst [vmem:[#allocation2 + $0x28] sm:$0xff] %v1057_v63  ;;  %1081 = vst [vmem:[#allocation2 + $0x68] sm:$0xff] %v1065_v0 }
 0x223 PF: > { %p1468_p11 = scmp.ne.s32.totalorder %s1752_s18, 1 }
 0x224   : > { %v1088_v1 = vld [vmem:[#allocation2] sm:$0xff] (!%p1468_p11)  ;;  %v1089_v2 = vld [vmem:[#allocation2 + $0x8] sm:$0xff] (!%p1468_p11)  ;;  %v1090_v6 = vld [vmem:[#allocation2 + $0x10] sm:$0xff] (!%p1468_p11) }
 0x225   : > { %1087 = sbr.rel (%p1468_p11) target bundleno = 564 (0x234), region = 56  ;;  %v1469_v3 = vld [vmem:[%s1955_s4] ss:$0 sm:$0xff] (!%p1468_p11)  ;;  %v1091_v7 = vld [vmem:[#allocation2 + $0x18] sm:$0xff] (!%p1468_p11)  ;;  %v1097_v20 = vld [vmem:[#allocation2 + $0x48] sm:$0xff] (!%p1468_p11) }
 0x226   : > { %v1111_v4 = vadd.f32 (!%p1468_p11), %v1469_v3, %v1088_v1  ;;  %v1112_v5 = vadd.f32 (!%p1468_p11), %v1469_v3, %v1089_v2  ;;  %v1113_v9 = vadd.f32 (!%p1468_p11), %v1469_v3, %v1090_v6  ;;  %v1114_v10 = vadd.f32 (!%p1468_p11), %v1469_v3, %v1091_v7  ;;  %v1094_v13 = vld [vmem:[#allocation2 + $0x30] sm:$0xff] (!%p1468_p11)  ;;  %v1096_v19 = vld [vmem:[#allocation2 + $0x40] sm:$0xff] (!%p1468_p11)  ;;  %v1099_v26 = vld [vmem:[#allocation2 + $0x58] sm:$0xff] (!%p1468_p11) }
 0x227   : > { %v1092_v8 = vld [vmem:[#allocation2 + $0x20] sm:$0xff] (!%p1468_p11)  ;;  %v1117_v18 = vadd.f32 (!%p1468_p11), %v1469_v3, %v1094_v13  ;;  %v1098_v21 = vld [vmem:[#allocation2 + $0x50] sm:$0xff] (!%p1468_p11)  ;;  %v1119_v31 = vadd.f32 (!%p1468_p11), %v1469_v3, %v1096_v19  ;;  %v1120_v35 = vadd.f32 (!%p1468_p11), %v1469_v3, %v1097_v20  ;;  %v1122_v41 = vadd.f32 (!%p1468_p11), %v1469_v3, %v1099_v26 }
 0x228   : > { %v1115_v12 = vadd.f32 (!%p1468_p11), %v1469_v3, %v1092_v8  ;;  %v1095_v14 = vld [vmem:[#allocation2 + $0x38] sm:$0xff] (!%p1468_p11)  ;;  %v1127_v15 = vmax.f32 (!%p1468_p11), %v1111_v4, 0.0  ;;  %v1128_v16 = vmax.f32 (!%p1468_p11), %v1112_v5, 0.0  ;;  %v1129_v22 = vmax.f32 (!%p1468_p11), %v1113_v9, 0.0  ;;  %v1100_v27 = vld [vmem:[#allocation2 + $0x60] sm:$0xff] (!%p1468_p11)  ;;  %v1102_v37 = vld [vmem:[#allocation2 + $0x70] sm:$0xff] (!%p1468_p11) }
 0x229   : > { %v1093_v11 = vld [vmem:[#allocation2 + $0x28] sm:$0xff] (!%p1468_p11)  ;;  %v1130_v23 = vmax.f32 (!%p1468_p11), %v1114_v10, 0.0  ;;  %v1118_v25 = vadd.f32 (!%p1468_p11), %v1469_v3, %v1095_v14  ;;  %v1133_v30 = vmax.f32 (!%p1468_p11), %v1117_v18, 0.0  ;;  %v1121_v36 = vadd.f32 (!%p1468_p11), %v1469_v3, %v1098_v21  ;;  %v1103_v38 = vld [vmem:[#allocation2 + $0x78] sm:$0xff] (!%p1468_p11) }
 0x22a   : > { %v1116_v17 = vadd.f32 (!%p1468_p11), %v1469_v3, %v1093_v11  ;;  %v1131_v24 = vmax.f32 (!%p1468_p11), %v1115_v12, 0.0  ;;  %v1509_v28 = vpack.c.bf16 (!%p1468_p11), %v1128_v16, %v1127_v15  ;;  %v1101_v32 = vld [vmem:[#allocation2 + $0x68] sm:$0xff] (!%p1468_p11)  ;;  %v1135_v40 = vmax.f32 (!%p1468_p11), %v1119_v31, 0.0 }
 0x22b   : > { %v1514_v33 = vpack.c.bf16 (!%p1468_p11), %v1130_v23, %v1129_v22  ;;  %v1134_v34 = vmax.f32 (!%p1468_p11), %v1118_v25, 0.0  ;;  %v1123_v42 = vadd.f32 (!%p1468_p11), %v1469_v3, %v1100_v27  ;;  %v1136_v44 = vmax.f32 (!%p1468_p11), %v1120_v35, 0.0 }
 0x22c   : > { %v1132_v29 = vmax.f32 %v1116_v17, 0.0  ;;  %1510 = vst [vmem:[%s1956_s5] sm:$0xff] %v1509_v28   ;;  %v1137_v45 = vmax.f32 %v1121_v36, 0.0  ;;  %v1124_v46 = vadd.f32 %v1469_v3, %v1101_v32  ;;  %v1138_v47 = vmax.f32 %v1122_v41, 0.0 }
 0x22d   : > { %1546 = vst [vmem:[%s1956_s5 + $0x8] sm:$0xff] %v1514_v33   ;;  %v1524_v43 = vpack.c.bf16 %v1134_v34, %v1133_v30  ;;  %v1139_v48 = vmax.f32 %v1123_v42, 0.0  ;;  %v1125_v49 = vadd.f32 %v1469_v3, %v1102_v37  ;;  %v1126_v50 = vadd.f32 %v1469_v3, %v1103_v38 }
 0x22e   : > { %v1519_v39 = vpack.c.bf16 %v1132_v29, %v1131_v24  ;;  %v1529_v51 = vpack.c.bf16 %v1136_v44, %v1135_v40  ;;  %v1140_v52 = vmax.f32 %v1124_v46, 0.0  ;;  %v1534_v53 = vpack.c.bf16 %v1138_v47, %v1137_v45 }
 0x22f   : > { %1548 = vst [vmem:[%s1956_s5 + $0x18] sm:$0xff] %v1524_v43   ;;  %v1141_v54 = vmax.f32 %v1125_v49, 0.0  ;;  %v1142_v55 = vmax.f32 %v1126_v50, 0.0 }
 0x230   : > { %1547 = vst [vmem:[%s1956_s5 + $0x10] sm:$0xff] %v1519_v39   ;;  %1549 = vst [vmem:[%s1956_s5 + $0x20] sm:$0xff] %v1529_v51   ;;  %v1539_v56 = vpack.c.bf16 %v1140_v52, %v1139_v48 }
 0x231   : > { %1550 = vst [vmem:[%s1956_s5 + $0x28] sm:$0xff] %v1534_v53   ;;  %v1544_v57 = vpack.c.bf16 %v1142_v55, %v1141_v54 }
 0x232   : > { %1551 = vst [vmem:[%s1956_s5 + $0x30] sm:$0xff] %v1539_v56  }
 0x233   : > { %1552 = vst [vmem:[%s1956_s5 + $0x38] sm:$0xff] %v1544_v57  }
 0x234 PF: > { %s15_s20 = sadd.s32 1, %s1760_s20   ;;  %s1957_s18 = smov %s1756_s19 }
 0x235   : > { %p12_p12 = scmp.ge.s32.totalorder %s15_s20, 4   ;;  %s1958_s19 = smov %s1960_s21 }
 0x237   :  { %14 = sbr.rel (!%p12_p12) target bundleno = 2 (0x2), region = 98 }

</bundles_post_ra>
